<compile_context>
chip_gen: v7x
topology: tpu7x:2x2x1
jax: 0.10.0
libtpu: 0.0.40
codegen_flags: <defaults>
</compile_context>

<pallas_src>
import jax
import jax.numpy as jnp
from jax import lax
from jax.experimental import pallas as pl

# ----------------------------- model dimensions -----------------------------
B = 2          # batch
S = 8          # sequence length
H = 32         # hidden size
NH = 2         # attention heads
HD = H // NH   # head dim
FF = 64        # FFN intermediate size
L_LABELS = 4   # num_labels
VOCAB = 100    # vocab size
NLAYERS = 2    # encoder layers
EPS = 1e-12    # BERT layernorm eps
T = B * S      # flattened tokens


def _full_spec(shape):
    """Whole-array block (grid=(1,)) — block dims equal full array dims."""
    n = len(shape)
    return pl.BlockSpec(shape, lambda i, _n=n: (0,) * _n)


def _layer_norm(x, g, b):
    mu = jnp.mean(x, axis=-1, keepdims=True)
    var = jnp.mean((x - mu) ** 2, axis=-1, keepdims=True)
    return (x - mu) * lax.rsqrt(var + EPS) * g + b


# --------------------------- fused forward kernel ---------------------------
def fused_forward_kernel(emb_ref, mask_ref, emb_ln_ref,
                         wqkv_ref, bqkv_ref, wo_ref, w1_ref, w2_ref,
                         vec_ref, bff_ref, wc_ref, bc_ref,
                         out_ref):
    bf16 = jnp.bfloat16
    add_mask = mask_ref[...]                                 # [B, S, S] additive key mask

    # ---- embedding LayerNorm fused into the kernel head ----
    eln = emb_ln_ref[...]                                    # [2, H] (gamma, beta)
    x = _layer_norm(emb_ref[...], eln[0:1], eln[1:2])        # [T, H] f32 residual stream

    for l in range(NLAYERS):                                 # static unroll; weights resident in VMEM
        vec = vec_ref[l]                                     # [6, H]: bo, ln1_g, ln1_b, b2, ln2_g, ln2_b
        bo, ln1_g, ln1_b = vec[0:1], vec[1:2], vec[2:3]
        b2, ln2_g, ln2_b = vec[3:4], vec[4:5], vec[5:6]

        xb = x.astype(bf16)

        # ---- fused QKV: ONE [T,H] @ [H,3H] matmul (softmax scale folded into Wq/bq) ----
        qkv = jnp.dot(xb, wqkv_ref[l],
                      preferred_element_type=jnp.float32) + bqkv_ref[l]        # [T, 3H] f32

        # ---- attention, per head (static lane slices, batch-leading einsums) ----
        ctx_parts = []
        for h in range(NH):
            qh = qkv[:, 0 * H + h * HD: 0 * H + (h + 1) * HD].reshape(B, S, HD)
            kh = qkv[:, 1 * H + h * HD: 1 * H + (h + 1) * HD].reshape(B, S, HD)
            vh = qkv[:, 2 * H + h * HD: 2 * H + (h + 1) * HD].reshape(B, S, HD)

            s = jnp.einsum('bqd,bkd->bqk', qh.astype(bf16), kh.astype(bf16),
                           preferred_element_type=jnp.float32) + add_mask      # [B, S, S]
            s = s - jnp.max(s, axis=-1, keepdims=True)
            p = jnp.exp(s)
            p = p * pl.reciprocal(jnp.sum(p, axis=-1, keepdims=True), approx=True)
            ctx_h = jnp.einsum('bqk,bkd->bqd', p.astype(bf16), vh.astype(bf16),
                               preferred_element_type=jnp.float32)             # [B, S, HD]
            ctx_parts.append(ctx_h.reshape(T, HD))
        ctx = jnp.concatenate(ctx_parts, axis=-1)                              # [T, H] head-major lanes

        # ---- output projection: ONE [T,H] @ [H,H] matmul ----
        attn = jnp.dot(ctx.astype(bf16), wo_ref[l],
                       preferred_element_type=jnp.float32) + bo                # [T, H]
        x1 = _layer_norm(x + attn, ln1_g, ln1_b)

        # ---- FFN: plain 2-D matmuls on [T, H] ----
        hdn = jnp.dot(x1.astype(bf16), w1_ref[l],
                      preferred_element_type=jnp.float32) + bff_ref[l]         # [T, FF]
        hdn = jax.nn.gelu(hdn, approximate=True)
        ffn = jnp.dot(hdn.astype(bf16), w2_ref[l],
                      preferred_element_type=jnp.float32) + b2                 # [T, H]
        x = _layer_norm(x1 + ffn, ln2_g, ln2_b)

    # ---- classifier head folded into the kernel tail ----
    cls = x.reshape(B, S, H)[:, 0, :]                                          # CLS tokens [B, H]
    out_ref[...] = jnp.dot(cls.astype(bf16), wc_ref[...],
                           preferred_element_type=jnp.float32) + bc_ref[...]


def fused_forward(emb2, add_mask, p):
    args = (emb2, add_mask, p['emb_ln'],
            p['wqkv'], p['bqkv'], p['wo'], p['w1'], p['w2'],
            p['vec_h'], p['bff'], p['wc'], p['bc'])
    return pl.pallas_call(
        fused_forward_kernel,
        out_shape=jax.ShapeDtypeStruct((B, L_LABELS), jnp.float32),
        grid=(1,),
        in_specs=[_full_spec(a.shape) for a in args],
        out_specs=_full_spec((B, L_LABELS)),
    )(*args)


# ------------------------------- parameters ---------------------------------
def init_params(key):
    keys = iter(jax.random.split(key, 64))

    def nrm(shape, scale=0.02):
        return jax.random.normal(next(keys), shape, jnp.float32) * scale

    scale = 1.0 / (HD ** 0.5)   # folded into Wq / bq

    wqkv_l, bqkv_l, wo_l, w1_l, w2_l, vec_l, bff_l = [], [], [], [], [], [], []
    for _ in range(NLAYERS):
        wq, wk, wv = nrm((H, H)), nrm((H, H)), nrm((H, H))    # stored [in, out], head-major out cols
        wo = nrm((H, H))
        w1, w2 = nrm((H, FF)), nrm((FF, H))
        bq = jnp.zeros((H,), jnp.float32)
        bk = jnp.zeros((H,), jnp.float32)
        bv = jnp.zeros((H,), jnp.float32)
        bo = jnp.zeros((H,), jnp.float32)
        b1 = jnp.zeros((FF,), jnp.float32)
        b2 = jnp.zeros((H,), jnp.float32)
        ln1_g = jnp.ones((H,), jnp.float32); ln1_b = jnp.zeros((H,), jnp.float32)
        ln2_g = jnp.ones((H,), jnp.float32); ln2_b = jnp.zeros((H,), jnp.float32)

        wqkv_l.append(jnp.concatenate([wq * scale, wk, wv], axis=1))           # [H, 3H]
        bqkv_l.append(jnp.concatenate([bq * scale, bk, bv]).reshape(1, 3 * H))  # [1, 3H]
        wo_l.append(wo)                                                         # [H, H]
        w1_l.append(w1)
        w2_l.append(w2)
        vec_l.append(jnp.stack([bo, ln1_g, ln1_b, b2, ln2_g, ln2_b], axis=0))   # [6, H]
        bff_l.append(b1.reshape(1, FF))                                         # [1, FF]

    return dict(
        tok_emb=nrm((VOCAB, H)),
        pos_emb=nrm((S, H)),
        emb_ln=jnp.stack([jnp.ones((H,), jnp.float32),
                          jnp.zeros((H,), jnp.float32)], axis=0),               # [2, H]
        # stacked / packed kernel parameters (weights stored bf16 for the MXU)
        wqkv=jnp.stack(wqkv_l).astype(jnp.bfloat16),   # [L, H, 3H]
        bqkv=jnp.stack(bqkv_l),                        # [L, 1, 3H] f32
        wo=jnp.stack(wo_l).astype(jnp.bfloat16),       # [L, H, H]
        w1=jnp.stack(w1_l).astype(jnp.bfloat16),       # [L, H, FF]
        w2=jnp.stack(w2_l).astype(jnp.bfloat16),       # [L, FF, H]
        vec_h=jnp.stack(vec_l),                        # [L, 6, H]  f32
        bff=jnp.stack(bff_l),                          # [L, 1, FF] f32
        wc=nrm((H, L_LABELS)).astype(jnp.bfloat16),    # nn.Linear(hidden, num_labels), [in, out]
        bc=jnp.zeros((1, L_LABELS), jnp.float32),
    )


# -------------------------------- forward -----------------------------------
@jax.jit
def emotion_classifier_forward(params, input_ids, attention_mask, labels):
    del labels  # forward returns logits only (labels unused), matching the nn.Module

    # TODO(synk): embedding-table gather stays outside the Pallas kernel.
    emb = jnp.take(params['tok_emb'], input_ids, axis=0) + params['pos_emb'][None, :, :]
    emb2 = emb.reshape(T, H)                                       # [B*S, H]

    # Additive key mask, computed once, shared across heads: [B, S, S].
    mask = attention_mask.astype(jnp.float32)                      # [B, S] (1 = keep, 0 = pad)
    add_mask = jnp.broadcast_to(((1.0 - mask) * (-1e9))[:, None, :], (B, S, S))

    return fused_forward(emb2, add_mask, params)                   # single fused Pallas kernel


if __name__ == "__main__":
    root = jax.random.PRNGKey(0)
    pkey, ikey = jax.random.split(root)

    params = init_params(pkey)
    input_ids = jax.random.randint(ikey, (B, S), 0, VOCAB, dtype=jnp.int32)
    attention_mask = jnp.array(
        [[1] * S,
         [1] * 5 + [0] * (S - 5)], dtype=jnp.int32)
    labels = jnp.zeros((B,), dtype=jnp.int32)        # unused in forward

    logits = emotion_classifier_forward(params, input_ids, attention_mask, labels)
    jax.block_until_ready(logits)
    assert logits.shape == (B, L_LABELS) and logits.dtype == jnp.float32
    print("KERNEL_OK")
</pallas_src>

<mosaic_0001>
module attributes {stable_mosaic.version = 11 : i64} {
  func.func @fused_forward_kernel(%arg0: i32, %arg1: memref<16x32xf32, #tpu.memory_space<vmem>>, %arg2: memref<2x8x8xf32, #tpu.memory_space<vmem>>, %arg3: memref<2x32xf32, #tpu.memory_space<vmem>>, %arg4: memref<2x32x96xbf16, #tpu.memory_space<vmem>>, %arg5: memref<2x1x96xf32, #tpu.memory_space<vmem>>, %arg6: memref<2x32x32xbf16, #tpu.memory_space<vmem>>, %arg7: memref<2x32x64xbf16, #tpu.memory_space<vmem>>, %arg8: memref<2x64x32xbf16, #tpu.memory_space<vmem>>, %arg9: memref<2x6x32xf32, #tpu.memory_space<vmem>>, %arg10: memref<2x1x64xf32, #tpu.memory_space<vmem>>, %arg11: memref<32x4xbf16, #tpu.memory_space<vmem>>, %arg12: memref<1x4xf32, #tpu.memory_space<vmem>>, %arg13: memref<2x4xf32, #tpu.memory_space<vmem>>) attributes {dimension_semantics = [#tpu.dimension_semantics<arbitrary>], iteration_bounds = array<i64: 1>, scalar_prefetch = 0 : i64, scratch_operands = 0 : i64, tpu.core_type = #tpu.core_type<tc>, window_params = [{pipeline_mode = #tpu.pipeline_mode<synchronous>, transform_indices = @transform_0, window_bounds = array<i64: 16, 32>}, {pipeline_mode = #tpu.pipeline_mode<synchronous>, transform_indices = @transform_1, window_bounds = array<i64: 2, 8, 8>}, {pipeline_mode = #tpu.pipeline_mode<synchronous>, transform_indices = @transform_2, window_bounds = array<i64: 2, 32>}, {pipeline_mode = #tpu.pipeline_mode<synchronous>, transform_indices = @transform_3, window_bounds = array<i64: 2, 32, 96>}, {pipeline_mode = #tpu.pipeline_mode<synchronous>, transform_indices = @transform_4, window_bounds = array<i64: 2, 1, 96>}, {pipeline_mode = #tpu.pipeline_mode<synchronous>, transform_indices = @transform_5, window_bounds = array<i64: 2, 32, 32>}, {pipeline_mode = #tpu.pipeline_mode<synchronous>, transform_indices = @transform_6, window_bounds = array<i64: 2, 32, 64>}, {pipeline_mode = #tpu.pipeline_mode<synchronous>, transform_indices = @transform_7, window_bounds = array<i64: 2, 64, 32>}, {pipeline_mode = #tpu.pipeline_mode<synchronous>, transform_indices = @transform_8, window_bounds = array<i64: 2, 6, 32>}, {pipeline_mode = #tpu.pipeline_mode<synchronous>, transform_indices = @transform_9, window_bounds = array<i64: 2, 1, 64>}, {pipeline_mode = #tpu.pipeline_mode<synchronous>, transform_indices = @transform_10, window_bounds = array<i64: 32, 4>}, {pipeline_mode = #tpu.pipeline_mode<synchronous>, transform_indices = @transform_11, window_bounds = array<i64: 1, 4>}, {pipeline_mode = #tpu.pipeline_mode<synchronous>, transform_indices = @transform_12, window_bounds = array<i64: 2, 4>}]} {
    %c0 = arith.constant 0 : index
    %c0_0 = arith.constant 0 : index
    %c0_1 = arith.constant 0 : index
    %0 = vector.load %arg2[%c0, %c0_0, %c0_1] : memref<2x8x8xf32, #tpu.memory_space<vmem>>, vector<2x8x8xf32>
    %c0_2 = arith.constant 0 : index
    %c0_3 = arith.constant 0 : index
    %1 = vector.load %arg3[%c0_2, %c0_3] : memref<2x32xf32, #tpu.memory_space<vmem>>, vector<2x32xf32>
    %c0_4 = arith.constant 0 : index
    %c0_5 = arith.constant 0 : index
    %2 = vector.load %arg1[%c0_4, %c0_5] : memref<16x32xf32, #tpu.memory_space<vmem>>, vector<16x32xf32>
    %3 = vector.extract_strided_slice %1 {offsets = [0, 0], sizes = [1, 32], strides = [1, 1]} : vector<2x32xf32> to vector<1x32xf32>
    %4 = vector.extract_strided_slice %1 {offsets = [1, 0], sizes = [1, 32], strides = [1, 1]} : vector<2x32xf32> to vector<1x32xf32>
    %cst = arith.constant dense<0.000000e+00> : vector<16xf32>
    %5 = vector.multi_reduction <add>, %2, %cst [1] : vector<16x32xf32> to vector<16xf32>
    %6 = vector.shape_cast %5 : vector<16xf32> to vector<16x1xf32>
    %cst_6 = arith.constant 3.200000e+01 : f32
    %7 = vector.broadcast %cst_6 : f32 to vector<16x1xf32>
    %8 = arith.divf %6, %7 : vector<16x1xf32>
    %9 = vector.broadcast %8 : vector<16x1xf32> to vector<16x32xf32>
    %10 = arith.subf %2, %9 : vector<16x32xf32>
    %11 = arith.mulf %10, %10 : vector<16x32xf32>
    %cst_7 = arith.constant dense<0.000000e+00> : vector<16xf32>
    %12 = vector.multi_reduction <add>, %11, %cst_7 [1] : vector<16x32xf32> to vector<16xf32>
    %13 = vector.shape_cast %12 : vector<16xf32> to vector<16x1xf32>
    %cst_8 = arith.constant 3.200000e+01 : f32
    %14 = vector.broadcast %cst_8 : f32 to vector<16x1xf32>
    %15 = arith.divf %13, %14 : vector<16x1xf32>
    %16 = vector.broadcast %8 : vector<16x1xf32> to vector<16x32xf32>
    %17 = arith.subf %2, %16 : vector<16x32xf32>
    %cst_9 = arith.constant 9.99999996E-13 : f32
    %18 = vector.broadcast %cst_9 : f32 to vector<16x1xf32>
    %19 = arith.addf %15, %18 : vector<16x1xf32>
    %20 = math.rsqrt %19 : vector<16x1xf32>
    %21 = vector.broadcast %20 : vector<16x1xf32> to vector<16x32xf32>
    %22 = arith.mulf %17, %21 : vector<16x32xf32>
    %23 = vector.broadcast %3 : vector<1x32xf32> to vector<16x32xf32>
    %24 = arith.mulf %22, %23 : vector<16x32xf32>
    %25 = vector.broadcast %4 : vector<1x32xf32> to vector<16x32xf32>
    %26 = arith.addf %24, %25 : vector<16x32xf32>
    %c0_10 = arith.constant 0 : index
    %c0_11 = arith.constant 0 : index
    %c0_12 = arith.constant 0 : index
    %27 = vector.load %arg9[%c0_10, %c0_11, %c0_12] : memref<2x6x32xf32, #tpu.memory_space<vmem>>, vector<1x6x32xf32>
    %28 = vector.shape_cast %27 : vector<1x6x32xf32> to vector<6x32xf32>
    %29 = vector.extract_strided_slice %28 {offsets = [0, 0], sizes = [1, 32], strides = [1, 1]} : vector<6x32xf32> to vector<1x32xf32>
    %30 = vector.extract_strided_slice %28 {offsets = [1, 0], sizes = [1, 32], strides = [1, 1]} : vector<6x32xf32> to vector<1x32xf32>
    %31 = vector.extract_strided_slice %28 {offsets = [2, 0], sizes = [1, 32], strides = [1, 1]} : vector<6x32xf32> to vector<1x32xf32>
    %32 = vector.extract_strided_slice %28 {offsets = [3, 0], sizes = [1, 32], strides = [1, 1]} : vector<6x32xf32> to vector<1x32xf32>
    %33 = vector.extract_strided_slice %28 {offsets = [4, 0], sizes = [1, 32], strides = [1, 1]} : vector<6x32xf32> to vector<1x32xf32>
    %34 = vector.extract_strided_slice %28 {offsets = [5, 0], sizes = [1, 32], strides = [1, 1]} : vector<6x32xf32> to vector<1x32xf32>
    %35 = arith.truncf %26 : vector<16x32xf32> to vector<16x32xbf16>
    %c0_13 = arith.constant 0 : index
    %c0_14 = arith.constant 0 : index
    %c0_15 = arith.constant 0 : index
    %36 = vector.load %arg4[%c0_13, %c0_14, %c0_15] : memref<2x32x96xbf16, #tpu.memory_space<vmem>>, vector<1x32x96xbf16>
    %37 = vector.shape_cast %36 : vector<1x32x96xbf16> to vector<32x96xbf16>
    %cst_16 = arith.constant dense<0.000000e+00> : vector<16x96xf32>
    %38 = tpu.matmul %35, %37, %cst_16 {dimension_numbers = #tpu.dot_dimension_numbers<[1], [0], [0], [1], [0, 0, 1, 1], [], []>} : vector<16x32xbf16>, vector<32x96xbf16>, vector<16x96xf32> -> vector<16x96xf32>
    %c0_17 = arith.constant 0 : index
    %c0_18 = arith.constant 0 : index
    %c0_19 = arith.constant 0 : index
    %39 = vector.load %arg5[%c0_17, %c0_18, %c0_19] : memref<2x1x96xf32, #tpu.memory_space<vmem>>, vector<1x1x96xf32>
    %40 = vector.shape_cast %39 : vector<1x1x96xf32> to vector<1x96xf32>
    %41 = vector.broadcast %40 : vector<1x96xf32> to vector<16x96xf32>
    %42 = arith.addf %38, %41 : vector<16x96xf32>
    %43 = vector.extract_strided_slice %42 {offsets = [0, 0], sizes = [16, 16], strides = [1, 1]} : vector<16x96xf32> to vector<16x16xf32>
    %44 = vector.shape_cast %43 : vector<16x16xf32> to vector<2x8x16xf32>
    %45 = vector.extract_strided_slice %42 {offsets = [0, 32], sizes = [16, 16], strides = [1, 1]} : vector<16x96xf32> to vector<16x16xf32>
    %46 = vector.shape_cast %45 : vector<16x16xf32> to vector<2x8x16xf32>
    %47 = vector.extract_strided_slice %42 {offsets = [0, 64], sizes = [16, 16], strides = [1, 1]} : vector<16x96xf32> to vector<16x16xf32>
    %48 = vector.shape_cast %47 : vector<16x16xf32> to vector<2x8x16xf32>
    %49 = arith.truncf %44 : vector<2x8x16xf32> to vector<2x8x16xbf16>
    %50 = arith.truncf %46 : vector<2x8x16xf32> to vector<2x8x16xbf16>
    "tpu.trace_start"() <{level = 10 : i32, message = "bqd,bkd->bqk"}> : () -> ()
    %cst_20 = arith.constant dense<0.000000e+00> : vector<2x8x8xf32>
    %51 = tpu.matmul %49, %50, %cst_20 {dimension_numbers = #tpu.dot_dimension_numbers<[2], [2], [1], [1], [0, 0, 0, 1, 1, 1], [0], [0]>} : vector<2x8x16xbf16>, vector<2x8x16xbf16>, vector<2x8x8xf32> -> vector<2x8x8xf32>
    "tpu.trace_stop"() : () -> ()
    %52 = arith.addf %51, %0 : vector<2x8x8xf32>
    %cst_21 = arith.constant dense<0xFF800000> : vector<2x8xf32>
    %53 = vector.multi_reduction <maximumf>, %52, %cst_21 [2] : vector<2x8x8xf32> to vector<2x8xf32>
    %54 = vector.shape_cast %53 : vector<2x8xf32> to vector<2x8x1xf32>
    %55 = vector.broadcast %54 : vector<2x8x1xf32> to vector<2x8x8xf32>
    %56 = arith.subf %52, %55 : vector<2x8x8xf32>
    %57 = math.exp %56 : vector<2x8x8xf32>
    %cst_22 = arith.constant dense<0.000000e+00> : vector<2x8xf32>
    %58 = vector.multi_reduction <add>, %57, %cst_22 [2] : vector<2x8x8xf32> to vector<2x8xf32>
    %59 = vector.shape_cast %58 : vector<2x8xf32> to vector<2x8x1xf32>
    %60 = tpu.reciprocal %59 {approx = true} : vector<2x8x1xf32> -> vector<2x8x1xf32>
    %61 = vector.broadcast %60 : vector<2x8x1xf32> to vector<2x8x8xf32>
    %62 = arith.mulf %57, %61 : vector<2x8x8xf32>
    %63 = arith.truncf %62 : vector<2x8x8xf32> to vector<2x8x8xbf16>
    %64 = arith.truncf %48 : vector<2x8x16xf32> to vector<2x8x16xbf16>
    "tpu.trace_start"() <{level = 10 : i32, message = "bqk,bkd->bqd"}> : () -> ()
    %cst_23 = arith.constant dense<0.000000e+00> : vector<2x8x16xf32>
    %65 = tpu.matmul %63, %64, %cst_23 {dimension_numbers = #tpu.dot_dimension_numbers<[2], [1], [1], [2], [0, 0, 0, 1, 1, 2], [0], [0]>} : vector<2x8x8xbf16>, vector<2x8x16xbf16>, vector<2x8x16xf32> -> vector<2x8x16xf32>
    "tpu.trace_stop"() : () -> ()
    %66 = vector.shape_cast %65 : vector<2x8x16xf32> to vector<16x16xf32>
    %67 = vector.extract_strided_slice %42 {offsets = [0, 16], sizes = [16, 16], strides = [1, 1]} : vector<16x96xf32> to vector<16x16xf32>
    %68 = vector.shape_cast %67 : vector<16x16xf32> to vector<2x8x16xf32>
    %69 = vector.extract_strided_slice %42 {offsets = [0, 48], sizes = [16, 16], strides = [1, 1]} : vector<16x96xf32> to vector<16x16xf32>
    %70 = vector.shape_cast %69 : vector<16x16xf32> to vector<2x8x16xf32>
    %71 = vector.extract_strided_slice %42 {offsets = [0, 80], sizes = [16, 16], strides = [1, 1]} : vector<16x96xf32> to vector<16x16xf32>
    %72 = vector.shape_cast %71 : vector<16x16xf32> to vector<2x8x16xf32>
    %73 = arith.truncf %68 : vector<2x8x16xf32> to vector<2x8x16xbf16>
    %74 = arith.truncf %70 : vector<2x8x16xf32> to vector<2x8x16xbf16>
    "tpu.trace_start"() <{level = 10 : i32, message = "bqd,bkd->bqk"}> : () -> ()
    %cst_24 = arith.constant dense<0.000000e+00> : vector<2x8x8xf32>
    %75 = tpu.matmul %73, %74, %cst_24 {dimension_numbers = #tpu.dot_dimension_numbers<[2], [2], [1], [1], [0, 0, 0, 1, 1, 1], [0], [0]>} : vector<2x8x16xbf16>, vector<2x8x16xbf16>, vector<2x8x8xf32> -> vector<2x8x8xf32>
    "tpu.trace_stop"() : () -> ()
    %76 = arith.addf %75, %0 : vector<2x8x8xf32>
    %cst_25 = arith.constant dense<0xFF800000> : vector<2x8xf32>
    %77 = vector.multi_reduction <maximumf>, %76, %cst_25 [2] : vector<2x8x8xf32> to vector<2x8xf32>
    %78 = vector.shape_cast %77 : vector<2x8xf32> to vector<2x8x1xf32>
    %79 = vector.broadcast %78 : vector<2x8x1xf32> to vector<2x8x8xf32>
    %80 = arith.subf %76, %79 : vector<2x8x8xf32>
    %81 = math.exp %80 : vector<2x8x8xf32>
    %cst_26 = arith.constant dense<0.000000e+00> : vector<2x8xf32>
    %82 = vector.multi_reduction <add>, %81, %cst_26 [2] : vector<2x8x8xf32> to vector<2x8xf32>
    %83 = vector.shape_cast %82 : vector<2x8xf32> to vector<2x8x1xf32>
    %84 = tpu.reciprocal %83 {approx = true} : vector<2x8x1xf32> -> vector<2x8x1xf32>
    %85 = vector.broadcast %84 : vector<2x8x1xf32> to vector<2x8x8xf32>
    %86 = arith.mulf %81, %85 : vector<2x8x8xf32>
    %87 = arith.truncf %86 : vector<2x8x8xf32> to vector<2x8x8xbf16>
    %88 = arith.truncf %72 : vector<2x8x16xf32> to vector<2x8x16xbf16>
    "tpu.trace_start"() <{level = 10 : i32, message = "bqk,bkd->bqd"}> : () -> ()
    %cst_27 = arith.constant dense<0.000000e+00> : vector<2x8x16xf32>
    %89 = tpu.matmul %87, %88, %cst_27 {dimension_numbers = #tpu.dot_dimension_numbers<[2], [1], [1], [2], [0, 0, 0, 1, 1, 2], [0], [0]>} : vector<2x8x8xbf16>, vector<2x8x16xbf16>, vector<2x8x16xf32> -> vector<2x8x16xf32>
    "tpu.trace_stop"() : () -> ()
    %90 = vector.shape_cast %89 : vector<2x8x16xf32> to vector<16x16xf32>
    %91 = tpu.concatenate %66, %90 in 1 : vector<16x16xf32>, vector<16x16xf32> -> vector<16x32xf32>
    %92 = arith.truncf %91 : vector<16x32xf32> to vector<16x32xbf16>
    %c0_28 = arith.constant 0 : index
    %c0_29 = arith.constant 0 : index
    %c0_30 = arith.constant 0 : index
    %93 = vector.load %arg6[%c0_28, %c0_29, %c0_30] : memref<2x32x32xbf16, #tpu.memory_space<vmem>>, vector<1x32x32xbf16>
    %94 = vector.shape_cast %93 : vector<1x32x32xbf16> to vector<32x32xbf16>
    %cst_31 = arith.constant dense<0.000000e+00> : vector<16x32xf32>
    %95 = tpu.matmul %92, %94, %cst_31 {dimension_numbers = #tpu.dot_dimension_numbers<[1], [0], [0], [1], [0, 0, 1, 1], [], []>} : vector<16x32xbf16>, vector<32x32xbf16>, vector<16x32xf32> -> vector<16x32xf32>
    %96 = vector.broadcast %29 : vector<1x32xf32> to vector<16x32xf32>
    %97 = arith.addf %95, %96 : vector<16x32xf32>
    %98 = arith.addf %26, %97 : vector<16x32xf32>
    %cst_32 = arith.constant dense<0.000000e+00> : vector<16xf32>
    %99 = vector.multi_reduction <add>, %98, %cst_32 [1] : vector<16x32xf32> to vector<16xf32>
    %100 = vector.shape_cast %99 : vector<16xf32> to vector<16x1xf32>
    %cst_33 = arith.constant 3.200000e+01 : f32
    %101 = vector.broadcast %cst_33 : f32 to vector<16x1xf32>
    %102 = arith.divf %100, %101 : vector<16x1xf32>
    %103 = vector.broadcast %102 : vector<16x1xf32> to vector<16x32xf32>
    %104 = arith.subf %98, %103 : vector<16x32xf32>
    %105 = arith.mulf %104, %104 : vector<16x32xf32>
    %cst_34 = arith.constant dense<0.000000e+00> : vector<16xf32>
    %106 = vector.multi_reduction <add>, %105, %cst_34 [1] : vector<16x32xf32> to vector<16xf32>
    %107 = vector.shape_cast %106 : vector<16xf32> to vector<16x1xf32>
    %cst_35 = arith.constant 3.200000e+01 : f32
    %108 = vector.broadcast %cst_35 : f32 to vector<16x1xf32>
    %109 = arith.divf %107, %108 : vector<16x1xf32>
    %110 = vector.broadcast %102 : vector<16x1xf32> to vector<16x32xf32>
    %111 = arith.subf %98, %110 : vector<16x32xf32>
    %cst_36 = arith.constant 9.99999996E-13 : f32
    %112 = vector.broadcast %cst_36 : f32 to vector<16x1xf32>
    %113 = arith.addf %109, %112 : vector<16x1xf32>
    %114 = math.rsqrt %113 : vector<16x1xf32>
    %115 = vector.broadcast %114 : vector<16x1xf32> to vector<16x32xf32>
    %116 = arith.mulf %111, %115 : vector<16x32xf32>
    %117 = vector.broadcast %30 : vector<1x32xf32> to vector<16x32xf32>
    %118 = arith.mulf %116, %117 : vector<16x32xf32>
    %119 = vector.broadcast %31 : vector<1x32xf32> to vector<16x32xf32>
    %120 = arith.addf %118, %119 : vector<16x32xf32>
    %121 = arith.truncf %120 : vector<16x32xf32> to vector<16x32xbf16>
    %c0_37 = arith.constant 0 : index
    %c0_38 = arith.constant 0 : index
    %c0_39 = arith.constant 0 : index
    %122 = vector.load %arg7[%c0_37, %c0_38, %c0_39] : memref<2x32x64xbf16, #tpu.memory_space<vmem>>, vector<1x32x64xbf16>
    %123 = vector.shape_cast %122 : vector<1x32x64xbf16> to vector<32x64xbf16>
    %cst_40 = arith.constant dense<0.000000e+00> : vector<16x64xf32>
    %124 = tpu.matmul %121, %123, %cst_40 {dimension_numbers = #tpu.dot_dimension_numbers<[1], [0], [0], [1], [0, 0, 1, 1], [], []>} : vector<16x32xbf16>, vector<32x64xbf16>, vector<16x64xf32> -> vector<16x64xf32>
    %c0_41 = arith.constant 0 : index
    %c0_42 = arith.constant 0 : index
    %c0_43 = arith.constant 0 : index
    %125 = vector.load %arg10[%c0_41, %c0_42, %c0_43] : memref<2x1x64xf32, #tpu.memory_space<vmem>>, vector<1x1x64xf32>
    %126 = vector.shape_cast %125 : vector<1x1x64xf32> to vector<1x64xf32>
    %127 = vector.broadcast %126 : vector<1x64xf32> to vector<16x64xf32>
    %128 = arith.addf %124, %127 : vector<16x64xf32>
    %129 = arith.mulf %128, %128 : vector<16x64xf32>
    %130 = arith.mulf %128, %129 : vector<16x64xf32>
    %cst_44 = arith.constant 4.471500e-02 : f32
    %131 = vector.broadcast %cst_44 : f32 to vector<16x64xf32>
    %132 = arith.mulf %131, %130 : vector<16x64xf32>
    %133 = arith.addf %128, %132 : vector<16x64xf32>
    %cst_45 = arith.constant 0.797884583 : f32
    %134 = vector.broadcast %cst_45 : f32 to vector<16x64xf32>
    %135 = arith.mulf %134, %133 : vector<16x64xf32>
    %136 = math.tanh %135 : vector<16x64xf32>
    %cst_46 = arith.constant 1.000000e+00 : f32
    %137 = vector.broadcast %cst_46 : f32 to vector<16x64xf32>
    %138 = arith.addf %137, %136 : vector<16x64xf32>
    %cst_47 = arith.constant 5.000000e-01 : f32
    %139 = vector.broadcast %cst_47 : f32 to vector<16x64xf32>
    %140 = arith.mulf %139, %138 : vector<16x64xf32>
    %141 = arith.mulf %128, %140 : vector<16x64xf32>
    %142 = arith.truncf %141 : vector<16x64xf32> to vector<16x64xbf16>
    %c0_48 = arith.constant 0 : index
    %c0_49 = arith.constant 0 : index
    %c0_50 = arith.constant 0 : index
    %143 = vector.load %arg8[%c0_48, %c0_49, %c0_50] : memref<2x64x32xbf16, #tpu.memory_space<vmem>>, vector<1x64x32xbf16>
    %144 = vector.shape_cast %143 : vector<1x64x32xbf16> to vector<64x32xbf16>
    %cst_51 = arith.constant dense<0.000000e+00> : vector<16x32xf32>
    %145 = tpu.matmul %142, %144, %cst_51 {dimension_numbers = #tpu.dot_dimension_numbers<[1], [0], [0], [1], [0, 0, 1, 1], [], []>} : vector<16x64xbf16>, vector<64x32xbf16>, vector<16x32xf32> -> vector<16x32xf32>
    %146 = vector.broadcast %32 : vector<1x32xf32> to vector<16x32xf32>
    %147 = arith.addf %145, %146 : vector<16x32xf32>
    %148 = arith.addf %120, %147 : vector<16x32xf32>
    %cst_52 = arith.constant dense<0.000000e+00> : vector<16xf32>
    %149 = vector.multi_reduction <add>, %148, %cst_52 [1] : vector<16x32xf32> to vector<16xf32>
    %150 = vector.shape_cast %149 : vector<16xf32> to vector<16x1xf32>
    %cst_53 = arith.constant 3.200000e+01 : f32
    %151 = vector.broadcast %cst_53 : f32 to vector<16x1xf32>
    %152 = arith.divf %150, %151 : vector<16x1xf32>
    %153 = vector.broadcast %152 : vector<16x1xf32> to vector<16x32xf32>
    %154 = arith.subf %148, %153 : vector<16x32xf32>
    %155 = arith.mulf %154, %154 : vector<16x32xf32>
    %cst_54 = arith.constant dense<0.000000e+00> : vector<16xf32>
    %156 = vector.multi_reduction <add>, %155, %cst_54 [1] : vector<16x32xf32> to vector<16xf32>
    %157 = vector.shape_cast %156 : vector<16xf32> to vector<16x1xf32>
    %cst_55 = arith.constant 3.200000e+01 : f32
    %158 = vector.broadcast %cst_55 : f32 to vector<16x1xf32>
    %159 = arith.divf %157, %158 : vector<16x1xf32>
    %160 = vector.broadcast %152 : vector<16x1xf32> to vector<16x32xf32>
    %161 = arith.subf %148, %160 : vector<16x32xf32>
    %cst_56 = arith.constant 9.99999996E-13 : f32
    %162 = vector.broadcast %cst_56 : f32 to vector<16x1xf32>
    %163 = arith.addf %159, %162 : vector<16x1xf32>
    %164 = math.rsqrt %163 : vector<16x1xf32>
    %165 = vector.broadcast %164 : vector<16x1xf32> to vector<16x32xf32>
    %166 = arith.mulf %161, %165 : vector<16x32xf32>
    %167 = vector.broadcast %33 : vector<1x32xf32> to vector<16x32xf32>
    %168 = arith.mulf %166, %167 : vector<16x32xf32>
    %169 = vector.broadcast %34 : vector<1x32xf32> to vector<16x32xf32>
    %170 = arith.addf %168, %169 : vector<16x32xf32>
    %c1 = arith.constant 1 : index
    %c0_57 = arith.constant 0 : index
    %c0_58 = arith.constant 0 : index
    %171 = vector.load %arg9[%c1, %c0_57, %c0_58] : memref<2x6x32xf32, #tpu.memory_space<vmem>>, vector<1x6x32xf32>
    %172 = vector.shape_cast %171 : vector<1x6x32xf32> to vector<6x32xf32>
    %173 = vector.extract_strided_slice %172 {offsets = [0, 0], sizes = [1, 32], strides = [1, 1]} : vector<6x32xf32> to vector<1x32xf32>
    %174 = vector.extract_strided_slice %172 {offsets = [1, 0], sizes = [1, 32], strides = [1, 1]} : vector<6x32xf32> to vector<1x32xf32>
    %175 = vector.extract_strided_slice %172 {offsets = [2, 0], sizes = [1, 32], strides = [1, 1]} : vector<6x32xf32> to vector<1x32xf32>
    %176 = vector.extract_strided_slice %172 {offsets = [3, 0], sizes = [1, 32], strides = [1, 1]} : vector<6x32xf32> to vector<1x32xf32>
    %177 = vector.extract_strided_slice %172 {offsets = [4, 0], sizes = [1, 32], strides = [1, 1]} : vector<6x32xf32> to vector<1x32xf32>
    %178 = vector.extract_strided_slice %172 {offsets = [5, 0], sizes = [1, 32], strides = [1, 1]} : vector<6x32xf32> to vector<1x32xf32>
    %179 = arith.truncf %170 : vector<16x32xf32> to vector<16x32xbf16>
    %c1_59 = arith.constant 1 : index
    %c0_60 = arith.constant 0 : index
    %c0_61 = arith.constant 0 : index
    %180 = vector.load %arg4[%c1_59, %c0_60, %c0_61] : memref<2x32x96xbf16, #tpu.memory_space<vmem>>, vector<1x32x96xbf16>
    %181 = vector.shape_cast %180 : vector<1x32x96xbf16> to vector<32x96xbf16>
    %cst_62 = arith.constant dense<0.000000e+00> : vector<16x96xf32>
    %182 = tpu.matmul %179, %181, %cst_62 {dimension_numbers = #tpu.dot_dimension_numbers<[1], [0], [0], [1], [0, 0, 1, 1], [], []>} : vector<16x32xbf16>, vector<32x96xbf16>, vector<16x96xf32> -> vector<16x96xf32>
    %c1_63 = arith.constant 1 : index
    %c0_64 = arith.constant 0 : index
    %c0_65 = arith.constant 0 : index
    %183 = vector.load %arg5[%c1_63, %c0_64, %c0_65] : memref<2x1x96xf32, #tpu.memory_space<vmem>>, vector<1x1x96xf32>
    %184 = vector.shape_cast %183 : vector<1x1x96xf32> to vector<1x96xf32>
    %185 = vector.broadcast %184 : vector<1x96xf32> to vector<16x96xf32>
    %186 = arith.addf %182, %185 : vector<16x96xf32>
    %187 = vector.extract_strided_slice %186 {offsets = [0, 0], sizes = [16, 16], strides = [1, 1]} : vector<16x96xf32> to vector<16x16xf32>
    %188 = vector.shape_cast %187 : vector<16x16xf32> to vector<2x8x16xf32>
    %189 = vector.extract_strided_slice %186 {offsets = [0, 32], sizes = [16, 16], strides = [1, 1]} : vector<16x96xf32> to vector<16x16xf32>
    %190 = vector.shape_cast %189 : vector<16x16xf32> to vector<2x8x16xf32>
    %191 = vector.extract_strided_slice %186 {offsets = [0, 64], sizes = [16, 16], strides = [1, 1]} : vector<16x96xf32> to vector<16x16xf32>
    %192 = vector.shape_cast %191 : vector<16x16xf32> to vector<2x8x16xf32>
    %193 = arith.truncf %188 : vector<2x8x16xf32> to vector<2x8x16xbf16>
    %194 = arith.truncf %190 : vector<2x8x16xf32> to vector<2x8x16xbf16>
    "tpu.trace_start"() <{level = 10 : i32, message = "bqd,bkd->bqk"}> : () -> ()
    %cst_66 = arith.constant dense<0.000000e+00> : vector<2x8x8xf32>
    %195 = tpu.matmul %193, %194, %cst_66 {dimension_numbers = #tpu.dot_dimension_numbers<[2], [2], [1], [1], [0, 0, 0, 1, 1, 1], [0], [0]>} : vector<2x8x16xbf16>, vector<2x8x16xbf16>, vector<2x8x8xf32> -> vector<2x8x8xf32>
    "tpu.trace_stop"() : () -> ()
    %196 = arith.addf %195, %0 : vector<2x8x8xf32>
    %cst_67 = arith.constant dense<0xFF800000> : vector<2x8xf32>
    %197 = vector.multi_reduction <maximumf>, %196, %cst_67 [2] : vector<2x8x8xf32> to vector<2x8xf32>
    %198 = vector.shape_cast %197 : vector<2x8xf32> to vector<2x8x1xf32>
    %199 = vector.broadcast %198 : vector<2x8x1xf32> to vector<2x8x8xf32>
    %200 = arith.subf %196, %199 : vector<2x8x8xf32>
    %201 = math.exp %200 : vector<2x8x8xf32>
    %cst_68 = arith.constant dense<0.000000e+00> : vector<2x8xf32>
    %202 = vector.multi_reduction <add>, %201, %cst_68 [2] : vector<2x8x8xf32> to vector<2x8xf32>
    %203 = vector.shape_cast %202 : vector<2x8xf32> to vector<2x8x1xf32>
    %204 = tpu.reciprocal %203 {approx = true} : vector<2x8x1xf32> -> vector<2x8x1xf32>
    %205 = vector.broadcast %204 : vector<2x8x1xf32> to vector<2x8x8xf32>
    %206 = arith.mulf %201, %205 : vector<2x8x8xf32>
    %207 = arith.truncf %206 : vector<2x8x8xf32> to vector<2x8x8xbf16>
    %208 = arith.truncf %192 : vector<2x8x16xf32> to vector<2x8x16xbf16>
    "tpu.trace_start"() <{level = 10 : i32, message = "bqk,bkd->bqd"}> : () -> ()
    %cst_69 = arith.constant dense<0.000000e+00> : vector<2x8x16xf32>
    %209 = tpu.matmul %207, %208, %cst_69 {dimension_numbers = #tpu.dot_dimension_numbers<[2], [1], [1], [2], [0, 0, 0, 1, 1, 2], [0], [0]>} : vector<2x8x8xbf16>, vector<2x8x16xbf16>, vector<2x8x16xf32> -> vector<2x8x16xf32>
    "tpu.trace_stop"() : () -> ()
    %210 = vector.shape_cast %209 : vector<2x8x16xf32> to vector<16x16xf32>
    %211 = vector.extract_strided_slice %186 {offsets = [0, 16], sizes = [16, 16], strides = [1, 1]} : vector<16x96xf32> to vector<16x16xf32>
    %212 = vector.shape_cast %211 : vector<16x16xf32> to vector<2x8x16xf32>
    %213 = vector.extract_strided_slice %186 {offsets = [0, 48], sizes = [16, 16], strides = [1, 1]} : vector<16x96xf32> to vector<16x16xf32>
    %214 = vector.shape_cast %213 : vector<16x16xf32> to vector<2x8x16xf32>
    %215 = vector.extract_strided_slice %186 {offsets = [0, 80], sizes = [16, 16], strides = [1, 1]} : vector<16x96xf32> to vector<16x16xf32>
    %216 = vector.shape_cast %215 : vector<16x16xf32> to vector<2x8x16xf32>
    %217 = arith.truncf %212 : vector<2x8x16xf32> to vector<2x8x16xbf16>
    %218 = arith.truncf %214 : vector<2x8x16xf32> to vector<2x8x16xbf16>
    "tpu.trace_start"() <{level = 10 : i32, message = "bqd,bkd->bqk"}> : () -> ()
    %cst_70 = arith.constant dense<0.000000e+00> : vector<2x8x8xf32>
    %219 = tpu.matmul %217, %218, %cst_70 {dimension_numbers = #tpu.dot_dimension_numbers<[2], [2], [1], [1], [0, 0, 0, 1, 1, 1], [0], [0]>} : vector<2x8x16xbf16>, vector<2x8x16xbf16>, vector<2x8x8xf32> -> vector<2x8x8xf32>
    "tpu.trace_stop"() : () -> ()
    %220 = arith.addf %219, %0 : vector<2x8x8xf32>
    %cst_71 = arith.constant dense<0xFF800000> : vector<2x8xf32>
    %221 = vector.multi_reduction <maximumf>, %220, %cst_71 [2] : vector<2x8x8xf32> to vector<2x8xf32>
    %222 = vector.shape_cast %221 : vector<2x8xf32> to vector<2x8x1xf32>
    %223 = vector.broadcast %222 : vector<2x8x1xf32> to vector<2x8x8xf32>
    %224 = arith.subf %220, %223 : vector<2x8x8xf32>
    %225 = math.exp %224 : vector<2x8x8xf32>
    %cst_72 = arith.constant dense<0.000000e+00> : vector<2x8xf32>
    %226 = vector.multi_reduction <add>, %225, %cst_72 [2] : vector<2x8x8xf32> to vector<2x8xf32>
    %227 = vector.shape_cast %226 : vector<2x8xf32> to vector<2x8x1xf32>
    %228 = tpu.reciprocal %227 {approx = true} : vector<2x8x1xf32> -> vector<2x8x1xf32>
    %229 = vector.broadcast %228 : vector<2x8x1xf32> to vector<2x8x8xf32>
    %230 = arith.mulf %225, %229 : vector<2x8x8xf32>
    %231 = arith.truncf %230 : vector<2x8x8xf32> to vector<2x8x8xbf16>
    %232 = arith.truncf %216 : vector<2x8x16xf32> to vector<2x8x16xbf16>
    "tpu.trace_start"() <{level = 10 : i32, message = "bqk,bkd->bqd"}> : () -> ()
    %cst_73 = arith.constant dense<0.000000e+00> : vector<2x8x16xf32>
    %233 = tpu.matmul %231, %232, %cst_73 {dimension_numbers = #tpu.dot_dimension_numbers<[2], [1], [1], [2], [0, 0, 0, 1, 1, 2], [0], [0]>} : vector<2x8x8xbf16>, vector<2x8x16xbf16>, vector<2x8x16xf32> -> vector<2x8x16xf32>
    "tpu.trace_stop"() : () -> ()
    %234 = vector.shape_cast %233 : vector<2x8x16xf32> to vector<16x16xf32>
    %235 = tpu.concatenate %210, %234 in 1 : vector<16x16xf32>, vector<16x16xf32> -> vector<16x32xf32>
    %236 = arith.truncf %235 : vector<16x32xf32> to vector<16x32xbf16>
    %c1_74 = arith.constant 1 : index
    %c0_75 = arith.constant 0 : index
    %c0_76 = arith.constant 0 : index
    %237 = vector.load %arg6[%c1_74, %c0_75, %c0_76] : memref<2x32x32xbf16, #tpu.memory_space<vmem>>, vector<1x32x32xbf16>
    %238 = vector.shape_cast %237 : vector<1x32x32xbf16> to vector<32x32xbf16>
    %cst_77 = arith.constant dense<0.000000e+00> : vector<16x32xf32>
    %239 = tpu.matmul %236, %238, %cst_77 {dimension_numbers = #tpu.dot_dimension_numbers<[1], [0], [0], [1], [0, 0, 1, 1], [], []>} : vector<16x32xbf16>, vector<32x32xbf16>, vector<16x32xf32> -> vector<16x32xf32>
    %240 = vector.broadcast %173 : vector<1x32xf32> to vector<16x32xf32>
    %241 = arith.addf %239, %240 : vector<16x32xf32>
    %242 = arith.addf %170, %241 : vector<16x32xf32>
    %cst_78 = arith.constant dense<0.000000e+00> : vector<16xf32>
    %243 = vector.multi_reduction <add>, %242, %cst_78 [1] : vector<16x32xf32> to vector<16xf32>
    %244 = vector.shape_cast %243 : vector<16xf32> to vector<16x1xf32>
    %cst_79 = arith.constant 3.200000e+01 : f32
    %245 = vector.broadcast %cst_79 : f32 to vector<16x1xf32>
    %246 = arith.divf %244, %245 : vector<16x1xf32>
    %247 = vector.broadcast %246 : vector<16x1xf32> to vector<16x32xf32>
    %248 = arith.subf %242, %247 : vector<16x32xf32>
    %249 = arith.mulf %248, %248 : vector<16x32xf32>
    %cst_80 = arith.constant dense<0.000000e+00> : vector<16xf32>
    %250 = vector.multi_reduction <add>, %249, %cst_80 [1] : vector<16x32xf32> to vector<16xf32>
    %251 = vector.shape_cast %250 : vector<16xf32> to vector<16x1xf32>
    %cst_81 = arith.constant 3.200000e+01 : f32
    %252 = vector.broadcast %cst_81 : f32 to vector<16x1xf32>
    %253 = arith.divf %251, %252 : vector<16x1xf32>
    %254 = vector.broadcast %246 : vector<16x1xf32> to vector<16x32xf32>
    %255 = arith.subf %242, %254 : vector<16x32xf32>
    %cst_82 = arith.constant 9.99999996E-13 : f32
    %256 = vector.broadcast %cst_82 : f32 to vector<16x1xf32>
    %257 = arith.addf %253, %256 : vector<16x1xf32>
    %258 = math.rsqrt %257 : vector<16x1xf32>
    %259 = vector.broadcast %258 : vector<16x1xf32> to vector<16x32xf32>
    %260 = arith.mulf %255, %259 : vector<16x32xf32>
    %261 = vector.broadcast %174 : vector<1x32xf32> to vector<16x32xf32>
    %262 = arith.mulf %260, %261 : vector<16x32xf32>
    %263 = vector.broadcast %175 : vector<1x32xf32> to vector<16x32xf32>
    %264 = arith.addf %262, %263 : vector<16x32xf32>
    %265 = arith.truncf %264 : vector<16x32xf32> to vector<16x32xbf16>
    %c1_83 = arith.constant 1 : index
    %c0_84 = arith.constant 0 : index
    %c0_85 = arith.constant 0 : index
    %266 = vector.load %arg7[%c1_83, %c0_84, %c0_85] : memref<2x32x64xbf16, #tpu.memory_space<vmem>>, vector<1x32x64xbf16>
    %267 = vector.shape_cast %266 : vector<1x32x64xbf16> to vector<32x64xbf16>
    %cst_86 = arith.constant dense<0.000000e+00> : vector<16x64xf32>
    %268 = tpu.matmul %265, %267, %cst_86 {dimension_numbers = #tpu.dot_dimension_numbers<[1], [0], [0], [1], [0, 0, 1, 1], [], []>} : vector<16x32xbf16>, vector<32x64xbf16>, vector<16x64xf32> -> vector<16x64xf32>
    %c1_87 = arith.constant 1 : index
    %c0_88 = arith.constant 0 : index
    %c0_89 = arith.constant 0 : index
    %269 = vector.load %arg10[%c1_87, %c0_88, %c0_89] : memref<2x1x64xf32, #tpu.memory_space<vmem>>, vector<1x1x64xf32>
    %270 = vector.shape_cast %269 : vector<1x1x64xf32> to vector<1x64xf32>
    %271 = vector.broadcast %270 : vector<1x64xf32> to vector<16x64xf32>
    %272 = arith.addf %268, %271 : vector<16x64xf32>
    %273 = arith.mulf %272, %272 : vector<16x64xf32>
    %274 = arith.mulf %272, %273 : vector<16x64xf32>
    %cst_90 = arith.constant 4.471500e-02 : f32
    %275 = vector.broadcast %cst_90 : f32 to vector<16x64xf32>
    %276 = arith.mulf %275, %274 : vector<16x64xf32>
    %277 = arith.addf %272, %276 : vector<16x64xf32>
    %cst_91 = arith.constant 0.797884583 : f32
    %278 = vector.broadcast %cst_91 : f32 to vector<16x64xf32>
    %279 = arith.mulf %278, %277 : vector<16x64xf32>
    %280 = math.tanh %279 : vector<16x64xf32>
    %cst_92 = arith.constant 1.000000e+00 : f32
    %281 = vector.broadcast %cst_92 : f32 to vector<16x64xf32>
    %282 = arith.addf %281, %280 : vector<16x64xf32>
    %cst_93 = arith.constant 5.000000e-01 : f32
    %283 = vector.broadcast %cst_93 : f32 to vector<16x64xf32>
    %284 = arith.mulf %283, %282 : vector<16x64xf32>
    %285 = arith.mulf %272, %284 : vector<16x64xf32>
    %286 = arith.truncf %285 : vector<16x64xf32> to vector<16x64xbf16>
    %c1_94 = arith.constant 1 : index
    %c0_95 = arith.constant 0 : index
    %c0_96 = arith.constant 0 : index
    %287 = vector.load %arg8[%c1_94, %c0_95, %c0_96] : memref<2x64x32xbf16, #tpu.memory_space<vmem>>, vector<1x64x32xbf16>
    %288 = vector.shape_cast %287 : vector<1x64x32xbf16> to vector<64x32xbf16>
    %cst_97 = arith.constant dense<0.000000e+00> : vector<16x32xf32>
    %289 = tpu.matmul %286, %288, %cst_97 {dimension_numbers = #tpu.dot_dimension_numbers<[1], [0], [0], [1], [0, 0, 1, 1], [], []>} : vector<16x64xbf16>, vector<64x32xbf16>, vector<16x32xf32> -> vector<16x32xf32>
    %290 = vector.broadcast %176 : vector<1x32xf32> to vector<16x32xf32>
    %291 = arith.addf %289, %290 : vector<16x32xf32>
    %292 = arith.addf %264, %291 : vector<16x32xf32>
    %cst_98 = arith.constant dense<0.000000e+00> : vector<16xf32>
    %293 = vector.multi_reduction <add>, %292, %cst_98 [1] : vector<16x32xf32> to vector<16xf32>
    %294 = vector.shape_cast %293 : vector<16xf32> to vector<16x1xf32>
    %cst_99 = arith.constant 3.200000e+01 : f32
    %295 = vector.broadcast %cst_99 : f32 to vector<16x1xf32>
    %296 = arith.divf %294, %295 : vector<16x1xf32>
    %297 = vector.broadcast %296 : vector<16x1xf32> to vector<16x32xf32>
    %298 = arith.subf %292, %297 : vector<16x32xf32>
    %299 = arith.mulf %298, %298 : vector<16x32xf32>
    %cst_100 = arith.constant dense<0.000000e+00> : vector<16xf32>
    %300 = vector.multi_reduction <add>, %299, %cst_100 [1] : vector<16x32xf32> to vector<16xf32>
    %301 = vector.shape_cast %300 : vector<16xf32> to vector<16x1xf32>
    %cst_101 = arith.constant 3.200000e+01 : f32
    %302 = vector.broadcast %cst_101 : f32 to vector<16x1xf32>
    %303 = arith.divf %301, %302 : vector<16x1xf32>
    %304 = vector.broadcast %296 : vector<16x1xf32> to vector<16x32xf32>
    %305 = arith.subf %292, %304 : vector<16x32xf32>
    %cst_102 = arith.constant 9.99999996E-13 : f32
    %306 = vector.broadcast %cst_102 : f32 to vector<16x1xf32>
    %307 = arith.addf %303, %306 : vector<16x1xf32>
    %308 = math.rsqrt %307 : vector<16x1xf32>
    %309 = vector.broadcast %308 : vector<16x1xf32> to vector<16x32xf32>
    %310 = arith.mulf %305, %309 : vector<16x32xf32>
    %311 = vector.broadcast %177 : vector<1x32xf32> to vector<16x32xf32>
    %312 = arith.mulf %310, %311 : vector<16x32xf32>
    %313 = vector.broadcast %178 : vector<1x32xf32> to vector<16x32xf32>
    %314 = arith.addf %312, %313 : vector<16x32xf32>
    %315 = vector.shape_cast %314 : vector<16x32xf32> to vector<2x8x32xf32>
    %316 = vector.extract_strided_slice %315 {offsets = [0, 0, 0], sizes = [2, 1, 32], strides = [1, 1, 1]} : vector<2x8x32xf32> to vector<2x1x32xf32>
    %317 = vector.shape_cast %316 : vector<2x1x32xf32> to vector<2x32xf32>
    %318 = arith.truncf %317 : vector<2x32xf32> to vector<2x32xbf16>
    %c0_103 = arith.constant 0 : index
    %c0_104 = arith.constant 0 : index
    %319 = vector.load %arg11[%c0_103, %c0_104] : memref<32x4xbf16, #tpu.memory_space<vmem>>, vector<32x4xbf16>
    %cst_105 = arith.constant dense<0.000000e+00> : vector<2x4xf32>
    %320 = tpu.matmul %318, %319, %cst_105 {dimension_numbers = #tpu.dot_dimension_numbers<[1], [0], [0], [1], [0, 0, 1, 1], [], []>} : vector<2x32xbf16>, vector<32x4xbf16>, vector<2x4xf32> -> vector<2x4xf32>
    %c0_106 = arith.constant 0 : index
    %c0_107 = arith.constant 0 : index
    %321 = vector.load %arg12[%c0_106, %c0_107] : memref<1x4xf32, #tpu.memory_space<vmem>>, vector<1x4xf32>
    %322 = vector.broadcast %321 : vector<1x4xf32> to vector<2x4xf32>
    %323 = arith.addf %320, %322 : vector<2x4xf32>
    %c0_108 = arith.constant 0 : index
    %c0_109 = arith.constant 0 : index
    %324 = vector.load %arg13[%c0_108, %c0_109] : memref<2x4xf32, #tpu.memory_space<vmem>>, vector<2x4xf32>
    tpu.vector_store %arg13[%c0_108, %c0_109], %323 {strides = array<i32>} : memref<2x4xf32, #tpu.memory_space<vmem>>, vector<2x4xf32>,
    return
  }
  func.func @transform_0(%arg0: i32) -> (i32, i32) {
    %c0_i32 = arith.constant 0 : i32
    %c0_i32_0 = arith.constant 0 : i32
    %c0_i32_1 = arith.constant 0 : i32
    return %c0_i32, %c0_i32_0 : i32, i32
  }
  func.func @transform_1(%arg0: i32) -> (i32, i32, i32) {
    %c0_i32 = arith.constant 0 : i32
    %c0_i32_0 = arith.constant 0 : i32
    %c0_i32_1 = arith.constant 0 : i32
    %c0_i32_2 = arith.constant 0 : i32
    return %c0_i32, %c0_i32_0, %c0_i32_1 : i32, i32, i32
  }
  func.func @transform_2(%arg0: i32) -> (i32, i32) {
    %c0_i32 = arith.constant 0 : i32
    %c0_i32_0 = arith.constant 0 : i32
    %c0_i32_1 = arith.constant 0 : i32
    return %c0_i32, %c0_i32_0 : i32, i32
  }
  func.func @transform_3(%arg0: i32) -> (i32, i32, i32) {
    %c0_i32 = arith.constant 0 : i32
    %c0_i32_0 = arith.constant 0 : i32
    %c0_i32_1 = arith.constant 0 : i32
    %c0_i32_2 = arith.constant 0 : i32
    return %c0_i32, %c0_i32_0, %c0_i32_1 : i32, i32, i32
  }
  func.func @transform_4(%arg0: i32) -> (i32, i32, i32) {
    %c0_i32 = arith.constant 0 : i32
    %c0_i32_0 = arith.constant 0 : i32
    %c0_i32_1 = arith.constant 0 : i32
    %c0_i32_2 = arith.constant 0 : i32
    return %c0_i32, %c0_i32_0, %c0_i32_1 : i32, i32, i32
  }
  func.func @transform_5(%arg0: i32) -> (i32, i32, i32) {
    %c0_i32 = arith.constant 0 : i32
    %c0_i32_0 = arith.constant 0 : i32
    %c0_i32_1 = arith.constant 0 : i32
    %c0_i32_2 = arith.constant 0 : i32
    return %c0_i32, %c0_i32_0, %c0_i32_1 : i32, i32, i32
  }
  func.func @transform_6(%arg0: i32) -> (i32, i32, i32) {
    %c0_i32 = arith.constant 0 : i32
    %c0_i32_0 = arith.constant 0 : i32
    %c0_i32_1 = arith.constant 0 : i32
    %c0_i32_2 = arith.constant 0 : i32
    return %c0_i32, %c0_i32_0, %c0_i32_1 : i32, i32, i32
  }
  func.func @transform_7(%arg0: i32) -> (i32, i32, i32) {
    %c0_i32 = arith.constant 0 : i32
    %c0_i32_0 = arith.constant 0 : i32
    %c0_i32_1 = arith.constant 0 : i32
    %c0_i32_2 = arith.constant 0 : i32
    return %c0_i32, %c0_i32_0, %c0_i32_1 : i32, i32, i32
  }
  func.func @transform_8(%arg0: i32) -> (i32, i32, i32) {
    %c0_i32 = arith.constant 0 : i32
    %c0_i32_0 = arith.constant 0 : i32
    %c0_i32_1 = arith.constant 0 : i32
    %c0_i32_2 = arith.constant 0 : i32
    return %c0_i32, %c0_i32_0, %c0_i32_1 : i32, i32, i32
  }
  func.func @transform_9(%arg0: i32) -> (i32, i32, i32) {
    %c0_i32 = arith.constant 0 : i32
    %c0_i32_0 = arith.constant 0 : i32
    %c0_i32_1 = arith.constant 0 : i32
    %c0_i32_2 = arith.constant 0 : i32
    return %c0_i32, %c0_i32_0, %c0_i32_1 : i32, i32, i32
  }
  func.func @transform_10(%arg0: i32) -> (i32, i32) {
    %c0_i32 = arith.constant 0 : i32
    %c0_i32_0 = arith.constant 0 : i32
    %c0_i32_1 = arith.constant 0 : i32
    return %c0_i32, %c0_i32_0 : i32, i32
  }
  func.func @transform_11(%arg0: i32) -> (i32, i32) {
    %c0_i32 = arith.constant 0 : i32
    %c0_i32_0 = arith.constant 0 : i32
    %c0_i32_1 = arith.constant 0 : i32
    return %c0_i32, %c0_i32_0 : i32, i32
  }
  func.func @transform_12(%arg0: i32) -> (i32, i32) {
    %c0_i32 = arith.constant 0 : i32
    %c0_i32_0 = arith.constant 0 : i32
    %c0_i32_1 = arith.constant 0 : i32
    return %c0_i32, %c0_i32_0 : i32, i32
  }
}

</mosaic_0001>

<bundles_post_ra>
// kernel: emotion_classifier_forward.1
= control target key start
LH: loop header
LB: loop body
LE: loop exit
PB: predicated region body
PF: predicated region fallthrough
CT: control target
= control target key end

     0   :  { %vm48_vm0 = vcmask 261120   ;;  %s2793_s0 = inlined_call_operand.vmem [shape: f32[16,32], index: 0, kind: input, shape index: {}]   ;;  %s2794_s1 = inlined_call_operand.vmem [shape: f32[2,8,8], index: 1, kind: input, shape index: {}]   ;;  %s2795_s2 = inlined_call_operand.vmem [shape: f32[2,32], index: 2, kind: input, shape index: {}]   ;;  %s2796_s3 = inlined_call_operand.vmem [shape: bf16[2,32,96], index: 3, kind: input, shape index: {}]   ;;  %s2797_s4 = inlined_call_operand.vmem [shape: f32[2,1,96], index: 4, kind: input, shape index: {}]   ;;  %s2798_s5 = inlined_call_operand.vmem [shape: bf16[2,32,32], index: 5, kind: input, shape index: {}]   ;;  %s2799_s6 = inlined_call_operand.vmem [shape: bf16[2,32,64], index: 6, kind: input, shape index: {}]   ;;  %s2800_s7 = inlined_call_operand.vmem [shape: bf16[2,64,32], index: 7, kind: input, shape index: {}]   ;;  %s2801_s8 = inlined_call_operand.vmem [shape: f32[2,6,32], index: 8, kind: input, shape index: {}]   ;;  %s2802_s9 = inlined_call_operand.vmem [shape: f32[2,1,64], index: 9, kind: input, shape index: {}]   ;;  %s2803_s10 = inlined_call_operand.vmem [shape: bf16[32,4], index: 10, kind: input, shape index: {}]   ;;  %s2804_s11 = inlined_call_operand.vmem [shape: f32[1,4], index: 11, kind: input, shape index: {}]   ;;  %s2805_s12 = inlined_call_operand.hbm [shape: f32[2,4], index: 12, kind: output, shape index: {}]  }
   0x1   :  { %v46_v0 = vld [vmem:[%s2793_s0] sm:$0xff]  ;;  %v47_v1 = vld [vmem:[%s2793_s0 + $0x8] sm:$0xff] }
   0x2   :  { %v49_v2 = vsel %vm48_vm0, %v46_v0, 0.0  ;;  %v52_v3 = vsel %vm48_vm0, %v47_v1, 0.0 }
   0x3   :  { %50 = vadd.xlane.f32.xlu0 %v49_v2 }
   0x7   :  { %53 = vadd.xlane.f32.xlu0 %v52_v3 }
   0x8   :  { %17 = vsyncpa [#allocation3], 0  ;;  %v2186_v14 = vld [vmem:[%s2796_s3] sm:$0xff]   ;;  %v2292_v15 = vmov 0.0   ;;  %v2187_v16 = vld [vmem:[%s2796_s3 + $0x8] sm:$0xff]   ;;  %vm2293_vm1 = vmmov 0   ;;  %v76_v21 = vlaneseq }
   0x9   :  { %1991 = vmatprep.subr.bf16.mxu0 %v2292_v15  ;;  %1999 = vmatprep.subr.bf16.mxu1 %v2292_v15  ;;  %v45_v26 = vld [vmem:[%s2795_s2] sm:$0x3]  ;;  %s2294_s13 = smov 96   ;;  %vm162_vm2 = vcmask 130048   ;;  %v2443_v54 = vld [vmem:[%s2794_s1 + $0x8] sm:$0xff]  ;;  %vm258_vm3 = vcmask 64512  }
   0xa   :  { %1992 = vmatpush3.bf16.msra.mxu0 %v2186_v14  ;;  %1995 = vmatprep.mubr.msk.bf16.mxu0 %vm2293_vm1, %v2292_v15  ;;  %v2390_v24 = vshrl.u32 %v76_v21, 7  ;;  %v1853_v39 = vld [vmem:[%s2797_s4] ss:$0 sm:$0xff]  ;;  %s2296_s18 = smov 80   ;;  %vm288_vm4 = vcmask 1043456   ;;  %s2297_s19 = smov 112  }
   0xb   :  { %1993 = vmatprep.subr.bf16.mxu0 %v2292_v15  ;;  %2001 = vmatprep.mubr.msk.bf16.mxu1 %vm2293_vm1, %v2292_v15  ;;  %v2438_v52 = vld [vmem:[%s2794_s1] sm:$0xff]  ;;  %s2295_s1 = smov 64   ;;  %s2298_s20 = smov 48   ;;  %vm838_vm5 = vcmask 523264   ;;  %vm1779_vm6 = vcmask 1041409   ;;  %vm1837_vm7 = vcmask 25600  }
   0xc   :  { %v2393_v25 = vsub.s32 0, %v2390_v24  ;;  %v2400_v30 = vsub.s32 1, %v2390_v24  ;;  %s2299_s0 = smov 16   ;;  %s2300_s29 = smov [#allocation2]  }
   0xe   :  { %1994 = vmatpush3.bf16.msra.mxu0 %v2187_v16  ;;  %v79_v29 = vrot.slane %v45_v26, %v2393_v25  ;;  %v85_v34 = vrot.slane %v45_v26, %v2400_v30 }
   0xf   :  { %2005 = vmatprep.subr.bf16.mxu0 %v2292_v15 }
  0x90   :  { %v51_v4 = vpop.xlane.xlu0 %50 }
  0x91   :  { %v56_v5 = vmul.f32 0.03125, %v51_v4 }
  0x93   :  { %v58_v6 = vsub.f32 %v46_v0, %v56_v5 }
  0x94   :  { %v54_v7 = vpop.xlane.xlu0 %53 }
  0x95   :  { %v57_v8 = vmul.f32 0.03125, %v54_v7  ;;  %v60_v9 = vmul.f32 %v58_v6, %v58_v6 }
  0x97   :  { %v59_v10 = vsub.f32 %v47_v1, %v57_v8  ;;  %v62_v11 = vsel %vm48_vm0, %v60_v9, 0.0 }
  0x98   :  { %63 = vadd.xlane.f32.xlu1 %v62_v11 }
  0x99   :  { %v61_v12 = vmul.f32 %v59_v10, %v59_v10 }
  0x9b   :  { %v65_v13 = vsel %vm48_vm0, %v61_v12, 0.0 }
  0x9c   :  { %66 = vadd.xlane.f32.xlu1 %v65_v13 }
 0x125   :  { %v64_v17 = vpop.xlane.xlu1 %63 }
 0x126   :  { %v68_v18 = vmul.f32 0.03125, %v64_v17 }
 0x128   :  { %v70_v19 = vadd.f32 1e-12, %v68_v18 }
 0x129   :  { %v67_v20 = vpop.xlane.xlu1 %66 }
 0x12a   :  { %2208 = vrsqrt.f32 %v70_v19  ;;  %v69_v22 = vmul.f32 0.03125, %v67_v20 }
 0x12c   :  { %v71_v23 = vadd.f32 1e-12, %v69_v22 }
 0x12e   :  { %2210 = vrsqrt.f32 %v71_v23 }
 0x134   :  { %v2209_v27 = vpop.eup %2208 }
 0x135   :  { %v74_v28 = vmul.f32 %v2209_v27, %v58_v6 }
 0x137   :  { %v80_v33 = vmul.f32 %v79_v29, %v74_v28 }
 0x138   :  { %v2211_v31 = vpop.eup %2210 }
 0x139   :  { %v75_v32 = vmul.f32 %v2211_v31, %v59_v10  ;;  %v2403_v36 = vadd.f32 %v85_v34, %v80_v33 }
 0x13b   :  { %v81_v35 = vmul.f32 %v79_v29, %v75_v32 }
 0x13d   :  { %v2405_v37 = vadd.f32 %v85_v34, %v81_v35 }
 0x13f   :  { %v89_v38 = vpack.c.bf16 %v2405_v37, %v2403_v36 }
 0x141   :  { %1996 = vmatmul.mubr.msk.bf16.vlgmr.msra.gmra.mrb[0].mxu0 %vm48_vm0, %v89_v38 }
 0x142   :  { %2007 = vmatprep.mubr.msk.bf16.mxu0 %vm2293_vm1, %v2292_v15 }
 0x214   :  { %v150_v40 = vpop.f32.mrb[0].mxu0 }
 0x215   :  { %v151_v41 = vadd.f32 %v1853_v39, %v150_v40  ;;  %v1997_v42 = vpop.f32.mrb[1].mxu0 }
 0x216   :  { %v153_v43 = vpop.f32.mrb[2].mxu0 }
 0x217   :  { %v2415_v44 = vpack.c.bf16 %v151_v41, %v151_v41  ;;  %v154_v45 = vadd.f32 %v1853_v39, %v153_v43  ;;  %v1998_v46 = vpop.f32.mrb[3].mxu0 }
 0x219   :  { %v2417_v47 = vpack.c.bf16 %v154_v45, %v154_v45  ;;  %160 = vrot.lane.b32.xlu0 %v2415_v44, %s2294_s13 }
 0x21b   :  { %210 = vrot.lane.b32.xlu1 %v2417_v47, %s2294_s13 }
 0x28b   :  { %v161_v48 = vpop.permute.xlu0 %160 }
 0x28c   :  { %v167_v49 = vsel %vm162_vm2, %v161_v48, 0 }
 0x28d   :  { %2000 = vmatpush3.bf16.xpose.msra.mxu1 %v167_v49  ;;  %v211_v50 = vpop.permute.xlu1 %210 }
 0x28e   :  { %v216_v51 = vsel %vm162_vm2, %v211_v50, 0  ;;  %2011 = vmatprep.subr.bf16.mxu1 %v2292_v15 }
 0x28f   :  { %2006 = vmatpush3.bf16.xpose.msra.mxu0 %v216_v51 }
 0x290   :  { %2017 = vmatprep.subr.bf16.mxu0 %v2292_v15 }
 0x294   :  { %2002 = vmatmul.mubr.msk.bf16.vlgmr.msra.gmra.mrb[0].mxu1 %vm162_vm2, %v2415_v44 }
 0x295   :  { %2013 = vmatprep.mubr.msk.bf16.mxu1 %vm2293_vm1, %v2292_v15 }
 0x296   :  { %2008 = vmatmul.mubr.msk.bf16.vlgmr.msra.gmra.mrb[4].mxu0 %vm162_vm2, %v2417_v47 }
 0x297   :  { %2019 = vmatprep.mubr.msk.bf16.mxu0 %vm2293_vm1, %v2292_v15 }
 0x367   :  { %v203_v53 = vpop.f32.mrb[0].mxu1 }
 0x368   :  { %v204_v55 = vadd.f32 %v203_v53, %v2438_v52  ;;  %v2003_v56 = vpop.f32.mrb[1].mxu1 }
 0x369   :  { %v206_v57 = vpop.f32.mrb[2].mxu1  ;;  %v252_v58 = vpop.f32.mrb[4].mxu0 }
 0x36a   :  { %v253_v59 = vadd.f32 %v252_v58, %v2443_v54  ;;  %v2004_v60 = vpop.f32.mrb[3].mxu1  ;;  %v2009_v61 = vpop.f32.mrb[5].mxu0  ;;  %v259_v62 = vsel %vm258_vm3, %v204_v55, -inf }
 0x36b   :  { %v255_v63 = vpop.f32.mrb[6].mxu0  ;;  %260 = vmax.xlane.f32.xlu1 %v259_v62 }
 0x36c   :  { %v2010_v0 = vpop.f32.mrb[7].mxu0  ;;  %v262_v1 = vsel %vm258_vm3, %v253_v59, -inf }
 0x36d   :  { %263 = vmax.xlane.f32.xlu0 %v262_v1 }
 0x37c   :  { %332 = vrot.lane.b32.xlu1 %v2417_v47, %s2295_s1 }
 0x380   :  { %382 = vrot.lane.b32.xlu1 %v2415_v44, %s2296_s18 }
 0x3f8   :  { %v261_v2 = vpop.xlane.xlu1 %260 }
 0x3f9   :  { %v265_v3 = vsub.f32 %v204_v55, %v261_v2 }
 0x3fa   :  { %v264_v4 = vpop.xlane.xlu0 %263 }
 0x3fb   :  { %v267_v5 = vmul.f32 1.442695, %v265_v3  ;;  %v266_v6 = vsub.f32 %v253_v59, %v264_v4 }
 0x3fc   :  { %v333_v7 = vpop.permute.xlu1 %332 }
 0x3fd   :  { %2212 = vpow2.f32 %v267_v5  ;;  %v269_v8 = vmul.f32 1.442695, %v266_v6  ;;  %v338_v9 = vsel %vm288_vm4, %v333_v7, 0 }
 0x3fe   :  { %2018 = vmatpush3.bf16.msra.mxu0 %v338_v9 }
 0x3ff   :  { %2214 = vpow2.f32 %v269_v8  ;;  %2029 = vmatprep.subr.bf16.mxu0 %v2292_v15 }
 0x400   :  { %v383_v14 = vpop.permute.xlu1 %382 }
 0x401   :  { %v388_v28 = vsel %vm162_vm2, %v383_v14, 0 }
 0x407   :  { %v2213_v10 = vpop.eup %2212 }
 0x408   :  { %v271_v11 = vsel %vm258_vm3, %v2213_v10, 0.0 }
 0x409   :  { %v2215_v12 = vpop.eup %2214  ;;  %272 = vadd.xlane.f32.xlu0 %v271_v11 }
 0x40a   :  { %v274_v13 = vsel %vm258_vm3, %v2215_v12, 0.0 }
 0x40b   :  { %275 = vadd.xlane.f32.xlu1 %v274_v13 }
 0x41c   :  { %432 = vrot.lane.b32.xlu1 %v2417_v47, %s2296_s18 }
 0x41f   :  { %283 = vrot.lane.b32.xlu0 %v2415_v44, %s2295_s1 }
 0x420   :  { %430 = vrot.lane.b32.xlu1 %v2417_v47, %s2297_s19 }
 0x423   :  { %380 = vrot.lane.b32.xlu0 %v2415_v44, %s2297_s19 }
 0x496   :  { %v273_v16 = vpop.xlane.xlu0 %272 }
 0x497   :  { %2216 = vrcp.f32 %v273_v16 }
 0x498   :  { %v276_v17 = vpop.xlane.xlu1 %275 }
 0x499   :  { %2218 = vrcp.f32 %v276_v17  ;;  %v2188_v17 = vld [vmem:[%s2798_s5] sm:$0xff]  }
 0x49a   :  { %v284_v18 = vpop.permute.xlu0 %283 }
 0x49b   :  { %v290_v19 = vsel %vm288_vm4, %v284_v18, 0  ;;  %v2189_v18 = vld [vmem:[%s2798_s5 + $0x8] sm:$0xff]  }
 0x49c   :  { %2012 = vmatpush3.bf16.msra.mxu1 %v290_v19  ;;  %v433_v27 = vpop.permute.xlu1 %432 }
 0x49d   :  { %2023 = vmatprep.subr.bf16.mxu1 %v2292_v15  ;;  %v438_v31 = vsel %vm162_vm2, %v433_v27, 0 }
 0x49e   :  { %v381_v32 = vpop.permute.xlu0 %380 }
 0x4a0   :  { %v431_v33 = vpop.permute.xlu1 %430 }
 0x4a1   :  { %v2217_v20 = vpop.eup %2216 }
 0x4a2   :  { %v279_v21 = vmul.f32 %v2217_v20, %v2213_v10 }
 0x4a3   :  { %v2219_v22 = vpop.eup %2218 }
 0x4a4   :  { %v280_v23 = vmul.f32 %v2219_v22, %v2215_v12  ;;  %v281_v26 = vpack.c.bf16 %v279_v21, %v279_v21 }
 0x4a6   :  { %2014 = vmatmul.mubr.msk.bf16.vlgmr.msra.gmra.mrb[4].mxu1 %vm258_vm3, %v281_v26  ;;  %v282_v29 = vpack.c.bf16 %v280_v23, %v280_v23 }
 0x4a7   :  { %2024 = vmatpush3.bf16.xpose.msra.mxu1 %v388_v28  ;;  %2025 = vmatprep.mubr.msk.bf16.mxu1 %vm2293_vm1, %v2292_v15 }
 0x4a8   :  { %2020 = vmatmul.mubr.msk.bf16.vlgmr.msra.gmra.mrb[8].mxu0 %vm258_vm3, %v282_v29  ;;  %2035 = vmatprep.subr.bf16.mxu1 %v2292_v15 }
 0x4a9   :  { %2030 = vmatpush3.bf16.xpose.msra.mxu0 %v438_v31  ;;  %2031 = vmatprep.mubr.msk.bf16.mxu0 %vm2293_vm1, %v2292_v15 }
 0x4aa   :  { %2041 = vmatprep.subr.bf16.mxu0 %v2292_v15 }
 0x4ae   :  { %2026 = vmatmul.mubr.msk.bf16.vlgmr.msra.gmra.mrb[8].mxu1 %vm162_vm2, %v381_v32 }
 0x4af   :  { %2037 = vmatprep.mubr.msk.bf16.mxu1 %vm2293_vm1, %v2292_v15 }
 0x4b0   :  { %2032 = vmatmul.mubr.msk.bf16.vlgmr.msra.gmra.mrb[12].mxu0 %vm162_vm2, %v431_v33 }
 0x4b1   :  { %2043 = vmatprep.mubr.msk.bf16.mxu0 %vm2293_vm1, %v2292_v15 }
 0x579   :  { %v2483_v34 = vpop.f32.mrb[4].mxu1 }
 0x57a   :  { %v2015_v35 = vpop.f32.mrb[5].mxu1 }
 0x57b   :  { %v329_v38 = vpop.f32.mrb[6].mxu1  ;;  %v2485_v39 = vpop.f32.mrb[8].mxu0 }
 0x57c   :  { %v2016_v40 = vpop.f32.mrb[7].mxu1  ;;  %v2021_v41 = vpop.f32.mrb[9].mxu0 }
 0x57d   :  { %v377_v42 = vpop.f32.mrb[10].mxu0  ;;  %v2526_v41 = vld [vmem:[%s2801_s8] sm:$0x3f] }
 0x57e   :  { %v2022_v43 = vpop.f32.mrb[11].mxu0  ;;  %v618_v42 = vrot.slane %v2526_v41, %v2393_v25 }
 0x581   :  { %v424_v45 = vpop.f32.mrb[8].mxu1 }
 0x582   :  { %v425_v46 = vadd.f32 %v424_v45, %v2438_v52  ;;  %v2027_v48 = vpop.f32.mrb[9].mxu1 }
 0x583   :  { %v427_v49 = vpop.f32.mrb[10].mxu1  ;;  %v474_v50 = vpop.f32.mrb[12].mxu0 }
 0x584   :  { %v475_v51 = vadd.f32 %v474_v50, %v2443_v54  ;;  %v2028_v53 = vpop.f32.mrb[11].mxu1  ;;  %v2033_v55 = vpop.f32.mrb[13].mxu0  ;;  %v480_v56 = vsel %vm258_vm3, %v425_v46, -inf }
 0x585   :  { %481 = vmax.xlane.f32.xlu0 %v480_v56  ;;  %v477_v57 = vpop.f32.mrb[14].mxu0 }
 0x586   :  { %v2034_v58 = vpop.f32.mrb[15].mxu0  ;;  %v483_v59 = vsel %vm258_vm3, %v475_v51, -inf }
 0x587   :  { %484 = vmax.xlane.f32.xlu1 %v483_v59 }
 0x598   :  { %552 = vrot.lane.b32.xlu1 %v2417_v47, %s2298_s20 }
 0x612   :  { %v482_v60 = vpop.xlane.xlu0 %481 }
 0x613   :  { %v486_v61 = vsub.f32 %v425_v46, %v482_v60 }
 0x614   :  { %v485_v62 = vpop.xlane.xlu1 %484 }
 0x615   :  { %v488_v63 = vmul.f32 1.442695, %v486_v61  ;;  %v487_v0 = vsub.f32 %v475_v51, %v485_v62 }
 0x617   :  { %2220 = vpow2.f32 %v488_v63  ;;  %v490_v1 = vmul.f32 1.442695, %v487_v0  ;;  %v2191_v0 = vld [vmem:[%s2799_s6 + $0x8] sm:$0xff]  }
 0x618   :  { %v553_v2 = vpop.permute.xlu1 %552 }
 0x619   :  { %2222 = vpow2.f32 %v490_v1  ;;  %v558_v3 = vsel %vm288_vm4, %v553_v2, 0 }
 0x61a   :  { %2042 = vmatpush3.bf16.msra.mxu0 %v558_v3 }
 0x61b   :  { %2055 = vmatprep.subr.bf16.mxu0 %v2292_v15 }
 0x621   :  { %v2221_v4 = vpop.eup %2220 }
 0x622   :  { %v492_v5 = vsel %vm258_vm3, %v2221_v4, 0.0 }
 0x623   :  { %v2223_v6 = vpop.eup %2222  ;;  %493 = vadd.xlane.f32.xlu0 %v492_v5 }
 0x624   :  { %v495_v47 = vsel %vm258_vm3, %v2223_v6, 0.0 }
 0x627   :  { %496 = vadd.xlane.f32.xlu0 %v495_v47 }
 0x63d   :  { %504 = vrot.lane.b32.xlu0 %v2415_v44, %s2298_s20 }
 0x6b0   :  { %v494_v7 = vpop.xlane.xlu0 %493 }
 0x6b1   :  { %2224 = vrcp.f32 %v494_v7  ;;  %v706_v7 = vrot.slane %v2526_v41, %v2400_v30 }
 0x6b4   :  { %v497_v8 = vpop.xlane.xlu0 %496 }
 0x6b5   :  { %2226 = vrcp.f32 %v497_v8 }
 0x6b8   :  { %v505_v9 = vpop.permute.xlu0 %504 }
 0x6b9   :  { %v510_v10 = vsel %vm288_vm4, %v505_v9, 0  ;;  %v711_v9 = vsub.s32 2, %v2390_v24 }
 0x6ba   :  { %2036 = vmatpush3.bf16.msra.mxu1 %v510_v10 }
 0x6bb   :  { %v2225_v11 = vpop.eup %2224  ;;  %2047 = vmatprep.subr.bf16.mxu1 %v2292_v15 }
 0x6bc   :  { %v500_v12 = vmul.f32 %v2225_v11, %v2221_v4 }
 0x6be   :  { %v502_v13 = vpack.c.bf16 %v500_v12, %v500_v12 }
 0x6bf   :  { %v2227_v14 = vpop.eup %2226 }
 0x6c0   :  { %v501_v16 = vmul.f32 %v2227_v14, %v2223_v6  ;;  %2038 = vmatmul.mubr.msk.bf16.vlgmr.msra.gmra.mrb[12].mxu1 %vm258_vm3, %v502_v13  ;;  %v712_v13 = vrot.slane %v2526_v41, %v711_v9 }
 0x6c1   :  { %2051 = vmatprep.mubr.msk.bf16.mxu1 %vm2293_vm1, %v2292_v15  ;;  %2048 = vmatpush3.bf16.msra.mxu1 %v2188_v17 }
 0x6c2   :  { %v503_v44 = vpack.c.bf16 %v501_v16, %v501_v16  ;;  %2049 = vmatprep.subr.bf16.mxu1 %v2292_v15 }
 0x6c4   :  { %2044 = vmatmul.mubr.msk.bf16.vlgmr.msra.gmra.mrb[16].mxu0 %vm258_vm3, %v503_v44 }
 0x6c5   :  { %2059 = vmatprep.mubr.msk.bf16.mxu0 %vm2293_vm1, %v2292_v15  ;;  %2050 = vmatpush3.bf16.msra.mxu1 %v2189_v18  ;;  %v2192_v18 = vld [vmem:[%s2800_s7] sm:$0xff]  }
 0x6c6   :  { %2063 = vmatprep.subr.bf16.mxu1 %v2292_v15 }
 0x793   :  { %v546_v19 = vpop.f32.mrb[12].mxu1 }
 0x794   :  { %v2039_v20 = vpop.f32.mrb[13].mxu1 }
 0x795   :  { %v549_v21 = vpop.f32.mrb[14].mxu1  ;;  %v2194_v20 = vld [vmem:[%s2800_s7 + $0x10] sm:$0xff]  }
 0x796   :  { %v2040_v22 = vpop.f32.mrb[15].mxu1  ;;  %v2195_v21 = vld [vmem:[%s2800_s7 + $0x18] sm:$0xff]  }
 0x797   :  { %v594_v23 = vpop.f32.mrb[16].mxu0  ;;  %v1868_v22 = vld [vmem:[%s2802_s9] ss:$0 sm:$0xff] }
 0x798   :  { %v2176_v26 = vpack.i.bf16 %v594_v23, %v546_v19  ;;  %v2045_v27 = vpop.f32.mrb[17].mxu0  ;;  %v2193_v19 = vld [vmem:[%s2800_s7 + $0x8] sm:$0xff]  }
 0x799   :  { %v597_v28 = vpop.f32.mrb[18].mxu0 }
 0x79a   :  { %2177 = vrot.lane.b32.xlu1 %v2176_v26, %s2299_s0  ;;  %v2046_v29 = vpop.f32.mrb[19].mxu0 }
 0x80c   :  { %v2178_v31 = vpop.permute.xlu1 %2177 }
 0x80d   :  { %v2180_v32 = vunpack.i.h.bf16 %v2178_v31  ;;  %v2179_v33 = vunpack.i.l.bf16 %v2178_v31 }
 0x80f   :  { %v609_v35 = vsel %vm162_vm2, %v2485_v39, %v2180_v32  ;;  %v608_v38 = vsel %vm162_vm2, %v2483_v34, %v2179_v33 }
 0x810   :  { %v610_v40 = vpack.c.bf16 %v609_v35, %v608_v38 }
 0x812   :  { %2052 = vmatmul.mubr.msk.bf16.vlgmr.msra.gmra.mrb[16].mxu1 %vm48_vm0, %v610_v40 }
 0x813   :  { %2071 = vmatprep.mubr.msk.bf16.mxu1 %vm2293_vm1, %v2292_v15  ;;  %2064 = vmatpush3.bf16.msra.mxu1 %v2192_v18 }
 0x814   :  { %2065 = vmatprep.subr.bf16.mxu1 %v2292_v15 }
 0x817   :  { %2066 = vmatpush3.bf16.msra.mxu1 %v2193_v19 }
 0x818   :  { %2067 = vmatprep.subr.bf16.mxu1 %v2292_v15 }
 0x81b   :  { %2068 = vmatpush3.bf16.msra.mxu1 %v2194_v20 }
 0x81c   :  { %2069 = vmatprep.subr.bf16.mxu1 %v2292_v15 }
 0x81f   :  { %2070 = vmatpush3.bf16.msra.mxu1 %v2195_v21 }
 0x820   :  { %2089 = vmatprep.subr.bf16.mxu1 %v2292_v15 }
 0x8e5   :  { %v668_v43 = vpop.f32.mrb[16].mxu1 }
 0x8e6   :  { %v669_v45 = vadd.f32 %v668_v43, %v618_v42  ;;  %v2053_v39 = vpop.f32.mrb[17].mxu1 }
 0x8e7   :  { %v671_v46 = vpop.f32.mrb[18].mxu1 }
 0x8e8   :  { %v672_v48 = vadd.f32 %v671_v46, %v618_v42  ;;  %v2054_v34 = vpop.f32.mrb[19].mxu1  ;;  %v675_v49 = vadd.f32 %v669_v45, %v2403_v36 }
 0x8ea   :  { %v677_v50 = vsel %vm48_vm0, %v675_v49, 0.0  ;;  %v676_v51 = vadd.f32 %v672_v48, %v2405_v37  ;;  %v2190_v37 = vld [vmem:[%s2799_s6] sm:$0xff]  }
 0x8eb   :  { %678 = vadd.xlane.f32.xlu1 %v677_v50  ;;  %2056 = vmatpush3.bf16.msra.mxu0 %v2190_v37 }
 0x8ec   :  { %v680_v53 = vsel %vm48_vm0, %v676_v51, 0.0  ;;  %2057 = vmatprep.subr.bf16.mxu0 %v2292_v15 }
 0x8ed   :  { %681 = vadd.xlane.f32.xlu0 %v680_v53 }
 0x8ef   :  { %2058 = vmatpush3.bf16.msra.mxu0 %v2191_v0 }
 0x8f0   :  { %2075 = vmatprep.subr.bf16.mxu0 %v2292_v15 }
 0x978   :  { %v679_v55 = vpop.xlane.xlu1 %678 }
 0x979   :  { %v683_v56 = vmul.f32 0.03125, %v679_v55 }
 0x97a   :  { %v682_v57 = vpop.xlane.xlu0 %681 }
 0x97b   :  { %v685_v58 = vsub.f32 %v675_v49, %v683_v56  ;;  %v684_v59 = vmul.f32 0.03125, %v682_v57 }
 0x97d   :  { %v686_v60 = vsub.f32 %v676_v51, %v684_v59  ;;  %v687_v61 = vmul.f32 %v685_v58, %v685_v58 }
 0x97f   :  { %v689_v62 = vsel %vm48_vm0, %v687_v61, 0.0  ;;  %v688_v63 = vmul.f32 %v686_v60, %v686_v60 }
 0x980   :  { %690 = vadd.xlane.f32.xlu0 %v689_v62 }
 0x981   :  { %v692_v36 = vsel %vm48_vm0, %v688_v63, 0.0 }
 0x984   :  { %693 = vadd.xlane.f32.xlu0 %v692_v36 }
 0xa0d   :  { %v691_v1 = vpop.xlane.xlu0 %690 }
 0xa0e   :  { %v695_v2 = vmul.f32 0.03125, %v691_v1 }
 0xa10   :  { %v697_v3 = vadd.f32 1e-12, %v695_v2 }
 0xa11   :  { %v694_v4 = vpop.xlane.xlu0 %693 }
 0xa12   :  { %2228 = vrsqrt.f32 %v697_v3  ;;  %v696_v5 = vmul.f32 0.03125, %v694_v4 }
 0xa14   :  { %v698_v6 = vadd.f32 1e-12, %v696_v5 }
 0xa16   :  { %2230 = vrsqrt.f32 %v698_v6 }
 0xa1c   :  { %v2229_v47 = vpop.eup %2228 }
 0xa1d   :  { %v701_v8 = vmul.f32 %v2229_v47, %v685_v58  ;;  %v812_v58 = vsub.s32 3, %v2390_v24 }
 0xa1f   :  { %v707_v11 = vmul.f32 %v706_v7, %v701_v8  ;;  %v813_v59 = vrot.slane %v2526_v41, %v812_v58 }
 0xa20   :  { %v2231_v10 = vpop.eup %2230 }
 0xa21   :  { %v702_v12 = vmul.f32 %v2231_v10, %v686_v60  ;;  %v713_v16 = vadd.f32 %v712_v13, %v707_v11 }
 0xa23   :  { %v708_v14 = vmul.f32 %v706_v7, %v702_v12 }
 0xa25   :  { %v714_v44 = vadd.f32 %v712_v13, %v708_v14  ;;  %v2196_v14 = vld [vmem:[%s2796_s3 + $0x10] sm:$0xff]  }
 0xa27   :  { %v715_v17 = vpack.c.bf16 %v714_v44, %v713_v16 }
 0xa29   :  { %2060 = vmatmul.mubr.msk.bf16.vlgmr.msra.gmra.mrb[20].mxu0 %vm48_vm0, %v715_v17 }
 0xa2a   :  { %2079 = vmatprep.mubr.msk.bf16.mxu0 %vm2293_vm1, %v2292_v15  ;;  %2076 = vmatpush3.bf16.msra.mxu0 %v2196_v14 }
 0xa2b   :  { %2077 = vmatprep.subr.bf16.mxu0 %v2292_v15 }
 0xafc   :  { %v776_v23 = vpop.f32.mrb[20].mxu0 }
 0xafd   :  { %v777_v26 = vadd.f32 %v1868_v22, %v776_v23  ;;  %v2061_v27 = vpop.f32.mrb[21].mxu0 }
 0xafe   :  { %v779_v28 = vpop.f32.mrb[22].mxu0 }
 0xaff   :  { %v783_v29 = vmul.f32 %v777_v26, %v777_v26  ;;  %v780_v31 = vadd.f32 %v1868_v22, %v779_v28  ;;  %v2062_v32 = vpop.f32.mrb[23].mxu0  ;;  %v913_v22 = vsub.s32 4, %v2390_v24 }
 0xb01   :  { %v785_v33 = vmul.f32 %v783_v29, %v777_v26  ;;  %v784_v35 = vmul.f32 %v780_v31, %v780_v31  ;;  %v914_v23 = vrot.slane %v2526_v41, %v913_v22 }
 0xb03   :  { %v787_v38 = vmul.f32 0.044715, %v785_v33  ;;  %v786_v40 = vmul.f32 %v784_v35, %v780_v31 }
 0xb05   :  { %v789_v42 = vadd.f32 %v787_v38, %v777_v26  ;;  %v788_v43 = vmul.f32 0.044715, %v786_v40 }
 0xb07   :  { %v791_v45 = vmul.f32 0.7978846, %v789_v42  ;;  %v790_v39 = vadd.f32 %v788_v43, %v780_v31  ;;  %v1883_v43 = vld [vmem:[%s2797_s4 + $0x1] ss:$0 sm:$0xff] }
 0xb09   :  { %2232 = vtanh.f32 %v791_v45  ;;  %v792_v46 = vmul.f32 0.7978846, %v790_v39 }
 0xb0b   :  { %2234 = vtanh.f32 %v792_v46 }
 0xb13   :  { %v2233_v48 = vpop.eup %2232 }
 0xb14   :  { %v795_v34 = vadd.f32 1.0, %v2233_v48 }
 0xb15   :  { %v2235_v49 = vpop.eup %2234 }
 0xb16   :  { %v797_v50 = vmul.f32 0.5, %v795_v34  ;;  %v796_v51 = vadd.f32 1.0, %v2235_v49 }
 0xb18   :  { %v798_v53 = vmul.f32 0.5, %v796_v51  ;;  %v799_v55 = vmul.f32 %v797_v50, %v777_v26  ;;  %v919_v26 = vsub.s32 5, %v2390_v24  ;;  %v1924_v24 = vld [vmem:[%s2804_s11] ss:$0 sm:$0xff] }
 0xb1a   :  { %v800_v56 = vmul.f32 %v798_v53, %v780_v31  ;;  %v920_v33 = vrot.slane %v2526_v41, %v919_v26 }
 0xb1c   :  { %v801_v57 = vpack.c.bf16 %v800_v56, %v799_v55 }
 0xb1e   :  { %2072 = vmatmul.mubr.msk.bf16.vlgmr.msra.gmra.mrb[20].mxu1 %vm838_vm5, %v801_v57 }
 0xb1f   :  { %2091 = vmatprep.mubr.msk.bf16.mxu1 %vm2293_vm1, %v2292_v15 }
 0xbf1   :  { %v876_v60 = vpop.f32.mrb[20].mxu1 }
 0xbf2   :  { %v877_v61 = vadd.f32 %v876_v60, %v813_v59  ;;  %v2073_v62 = vpop.f32.mrb[21].mxu1 }
 0xbf3   :  { %v879_v63 = vpop.f32.mrb[22].mxu1 }
 0xbf4   :  { %v880_v36 = vadd.f32 %v879_v63, %v813_v59  ;;  %v2074_v37 = vpop.f32.mrb[23].mxu1  ;;  %v883_v0 = vadd.f32 %v877_v61, %v713_v16  ;;  %v2197_v16 = vld [vmem:[%s2796_s3 + $0x18] sm:$0xff]   ;;  %s1845_s3 = sshll.u32 %s2300_s29, 4  ;;  %s1846_s3 = int_to_ptr.vmem [resolvable:$true] %s1845_s3 }
 0xbf5   :  { %2078 = vmatpush3.bf16.msra.mxu0 %v2197_v16  ;;  %s2268_s2 = scalar_lea.vmem %s1846_s3, 32  ;;  %p2273_p1 = scmp.lt.s32.totalorder %s1846_s3, %s1846_s3 }
 0xbf6   :  { %v885_v1 = vsel %vm48_vm0, %v883_v0, 0.0  ;;  %v884_v2 = vadd.f32 %v880_v36, %v714_v44  ;;  %2083 = vmatprep.subr.bf16.mxu0 %v2292_v15  ;;  %p2269_p0 = scmp.ne.s32.totalorder %s1846_s3, %s2268_s2  ;;  %p2274_p2 = scmp.lt.s32.totalorder %s2268_s2, %s2268_s2 }
 0xbf7   :  { %886 = vadd.xlane.f32.xlu1 %v885_v1 }
 0xbf8   :  { %v888_v3 = vsel %vm48_vm0, %v884_v2, 0.0  ;;  %p2275_p3 = por %p2274_p2, %p2273_p1 }
 0xbf9   :  { %889 = vadd.xlane.f32.xlu0 %v888_v3 }
 0xbfa   :  { %p2276_p4 = pnand %p2275_p3, %p2269_p0 }
 0xc84   :  { %v887_v4 = vpop.xlane.xlu1 %886 }
 0xc85   :  { %v891_v5 = vmul.f32 0.03125, %v887_v4 }
 0xc86   :  { %v890_v6 = vpop.xlane.xlu0 %889 }
 0xc87   :  { %v893_v47 = vsub.f32 %v883_v0, %v891_v5  ;;  %v892_v7 = vmul.f32 0.03125, %v890_v6 }
 0xc89   :  { %v894_v8 = vsub.f32 %v884_v2, %v892_v7  ;;  %v895_v10 = vmul.f32 %v893_v47, %v893_v47 }
 0xc8b   :  { %v897_v11 = vsel %vm48_vm0, %v895_v10, 0.0  ;;  %v896_v12 = vmul.f32 %v894_v8, %v894_v8 }
 0xc8c   :  { %898 = vadd.xlane.f32.xlu1 %v897_v11 }
 0xc8d   :  { %v900_v13 = vsel %vm48_vm0, %v896_v12, 0.0 }
 0xc8e   :  { %901 = vadd.xlane.f32.xlu0 %v900_v13 }
 0xd19   :  { %v899_v44 = vpop.xlane.xlu1 %898 }
 0xd1a   :  { %v903_v17 = vmul.f32 0.03125, %v899_v44 }
 0xd1b   :  { %v902_v18 = vpop.xlane.xlu0 %901 }
 0xd1c   :  { %v905_v19 = vadd.f32 1e-12, %v903_v17  ;;  %v904_v20 = vmul.f32 0.03125, %v902_v18 }
 0xd1e   :  { %2236 = vrsqrt.f32 %v905_v19  ;;  %v906_v21 = vadd.f32 1e-12, %v904_v20 }
 0xd20   :  { %2238 = vrsqrt.f32 %v906_v21 }
 0xd28   :  { %v2237_v27 = vpop.eup %2236 }
 0xd29   :  { %v909_v28 = vmul.f32 %v2237_v27, %v893_v47 }
 0xd2a   :  { %v2239_v29 = vpop.eup %2238 }
 0xd2b   :  { %v915_v31 = vmul.f32 %v914_v23, %v909_v28  ;;  %v910_v32 = vmul.f32 %v2239_v29, %v894_v8 }
 0xd2d   :  { %v916_v35 = vmul.f32 %v914_v23, %v910_v32  ;;  %v2599_v38 = vadd.f32 %v920_v33, %v915_v31 }
 0xd2f   :  { %v2601_v40 = vadd.f32 %v920_v33, %v916_v35 }
 0xd31   :  { %v925_v42 = vpack.c.bf16 %v2601_v40, %v2599_v38 }
 0xd33   :  { %2080 = vmatmul.mubr.msk.bf16.vlgmr.msra.gmra.mrb[24].mxu0 %vm48_vm0, %v925_v42 }
 0xd34   :  { %2085 = vmatprep.mubr.msk.bf16.mxu0 %vm2293_vm1, %v2292_v15 }
 0xe06   :  { %v988_v45 = vpop.f32.mrb[24].mxu0 }
 0xe07   :  { %v989_v39 = vadd.f32 %v1883_v43, %v988_v45  ;;  %v2081_v41 = vpop.f32.mrb[25].mxu0 }
 0xe08   :  { %v991_v46 = vpop.f32.mrb[26].mxu0 }
 0xe09   :  { %v2611_v48 = vpack.c.bf16 %v989_v39, %v989_v39  ;;  %v992_v34 = vadd.f32 %v1883_v43, %v991_v46  ;;  %v2082_v49 = vpop.f32.mrb[27].mxu0 }
 0xe0b   :  { %v2613_v50 = vpack.c.bf16 %v992_v34, %v992_v34  ;;  %998 = vrot.lane.b32.xlu1 %v2611_v48, %s2294_s13 }
 0xe0d   :  { %1047 = vrot.lane.b32.xlu0 %v2613_v50, %s2294_s13 }
 0xe7d   :  { %v999_v51 = vpop.permute.xlu1 %998 }
 0xe7e   :  { %v1004_v53 = vsel %vm162_vm2, %v999_v51, 0 }
 0xe7f   :  { %2084 = vmatpush3.bf16.xpose.msra.mxu0 %v1004_v53  ;;  %v1048_v55 = vpop.permute.xlu0 %1047 }
 0xe80   :  { %v1053_v56 = vsel %vm162_vm2, %v1048_v55, 0  ;;  %2095 = vmatprep.subr.bf16.mxu0 %v2292_v15 }
 0xe81   :  { %2090 = vmatpush3.bf16.xpose.msra.mxu1 %v1053_v56 }
 0xe82   :  { %2101 = vmatprep.subr.bf16.mxu1 %v2292_v15 }
 0xe86   :  { %2086 = vmatmul.mubr.msk.bf16.vlgmr.msra.gmra.mrb[28].mxu0 %vm162_vm2, %v2611_v48 }
 0xe87   :  { %2097 = vmatprep.mubr.msk.bf16.mxu0 %vm2293_vm1, %v2292_v15 }
 0xe88   :  { %2092 = vmatmul.mubr.msk.bf16.vlgmr.msra.gmra.mrb[24].mxu1 %vm162_vm2, %v2613_v50 }
 0xe89   :  { %2103 = vmatprep.mubr.msk.bf16.mxu1 %vm2293_vm1, %v2292_v15 }
 0xf59   :  { %v1040_v57 = vpop.f32.mrb[28].mxu0 }
 0xf5a   :  { %v1041_v59 = vadd.f32 %v1040_v57, %v2438_v52  ;;  %v2087_v60 = vpop.f32.mrb[29].mxu0 }
 0xf5b   :  { %v1043_v61 = vpop.f32.mrb[30].mxu0  ;;  %v1089_v62 = vpop.f32.mrb[24].mxu1 }
 0xf5c   :  { %v1090_v63 = vadd.f32 %v1089_v62, %v2443_v54  ;;  %v2088_v36 = vpop.f32.mrb[31].mxu0  ;;  %v2093_v37 = vpop.f32.mrb[25].mxu1  ;;  %v1095_v0 = vsel %vm258_vm3, %v1041_v59, -inf }
 0xf5d   :  { %v1092_v1 = vpop.f32.mrb[26].mxu1  ;;  %1096 = vmax.xlane.f32.xlu1 %v1095_v0 }
 0xf5e   :  { %v2094_v2 = vpop.f32.mrb[27].mxu1  ;;  %v1098_v3 = vsel %vm258_vm3, %v1090_v63, -inf }
 0xf5f   :  { %1099 = vmax.xlane.f32.xlu0 %v1098_v3 }
 0xf6e   :  { %1119 = vrot.lane.b32.xlu1 %v2611_v48, %s2295_s1 }
 0xfea   :  { %v1097_v4 = vpop.xlane.xlu1 %1096 }
 0xfeb   :  { %v1101_v5 = vsub.f32 %v1041_v59, %v1097_v4 }
 0xfec   :  { %v1100_v6 = vpop.xlane.xlu0 %1099 }
 0xfed   :  { %v1103_v47 = vmul.f32 1.442695, %v1101_v5  ;;  %v1102_v7 = vsub.f32 %v1090_v63, %v1100_v6 }
 0xfee   :  { %v1120_v8 = vpop.permute.xlu1 %1119 }
 0xfef   :  { %2240 = vpow2.f32 %v1103_v47  ;;  %v1105_v10 = vmul.f32 1.442695, %v1102_v7  ;;  %v1125_v11 = vsel %vm288_vm4, %v1120_v8, 0 }
 0xff0   :  { %2096 = vmatpush3.bf16.msra.mxu0 %v1125_v11 }
 0xff1   :  { %2242 = vpow2.f32 %v1105_v10  ;;  %2107 = vmatprep.subr.bf16.mxu0 %v2292_v15 }
 0xff9   :  { %v2241_v12 = vpop.eup %2240 }
 0xffa   :  { %v1107_v13 = vsel %vm258_vm3, %v2241_v12, 0.0 }
 0xffb   :  { %v2243_v14 = vpop.eup %2242  ;;  %1108 = vadd.xlane.f32.xlu1 %v1107_v13 }
 0xffc   :  { %v1110_v16 = vsel %vm258_vm3, %v2243_v14, 0.0 }
 0xffd   :  { %1111 = vadd.xlane.f32.xlu0 %v1110_v16 }
0x100c   :  { %1217 = vrot.lane.b32.xlu1 %v2611_v48, %s2296_s18 }
0x1010   :  { %1267 = vrot.lane.b32.xlu1 %v2613_v50, %s2296_s18 }
0x1013   :  { %1167 = vrot.lane.b32.xlu0 %v2613_v50, %s2295_s1 }
0x1014   :  { %1215 = vrot.lane.b32.xlu1 %v2611_v48, %s2297_s19 }
0x1017   :  { %1265 = vrot.lane.b32.xlu0 %v2613_v50, %s2297_s19 }
0x1088   :  { %v1109_v44 = vpop.xlane.xlu1 %1108 }
0x1089   :  { %2244 = vrcp.f32 %v1109_v44 }
0x108a   :  { %v1112_v17 = vpop.xlane.xlu0 %1111 }
0x108b   :  { %2246 = vrcp.f32 %v1112_v17 }
0x108c   :  { %v1218_v20 = vpop.permute.xlu1 %1217 }
0x108d   :  { %v1223_v32 = vsel %vm162_vm2, %v1218_v20, 0  ;;  %v2198_v20 = vld [vmem:[%s2798_s5 + $0x10] sm:$0xff]  }
0x108e   :  { %v1168_v18 = vpop.permute.xlu0 %1167 }
0x108f   :  { %v1173_v19 = vsel %vm288_vm4, %v1168_v18, 0 }
0x1090   :  { %2102 = vmatpush3.bf16.msra.mxu1 %v1173_v19  ;;  %v1268_v31 = vpop.permute.xlu1 %1267 }
0x1091   :  { %2113 = vmatprep.subr.bf16.mxu1 %v2292_v15  ;;  %v1273_v35 = vsel %vm162_vm2, %v1268_v31, 0 }
0x1092   :  { %v1266_v43 = vpop.permute.xlu0 %1265 }
0x1093   :  { %v2245_v21 = vpop.eup %2244 }
0x1094   :  { %v1115_v23 = vmul.f32 %v2245_v21, %v2241_v12  ;;  %v1216_v42 = vpop.permute.xlu1 %1215  ;;  %v2199_v21 = vld [vmem:[%s2798_s5 + $0x18] sm:$0xff]  }
0x1095   :  { %v2247_v27 = vpop.eup %2246 }
0x1096   :  { %v1116_v28 = vmul.f32 %v2247_v27, %v2243_v14  ;;  %v1117_v29 = vpack.c.bf16 %v1115_v23, %v1115_v23 }
0x1098   :  { %2098 = vmatmul.mubr.msk.bf16.vlgmr.msra.gmra.mrb[32].mxu0 %vm258_vm3, %v1117_v29  ;;  %v1118_v33 = vpack.c.bf16 %v1116_v28, %v1116_v28 }
0x1099   :  { %2108 = vmatpush3.bf16.xpose.msra.mxu0 %v1223_v32  ;;  %2109 = vmatprep.mubr.msk.bf16.mxu0 %vm2293_vm1, %v2292_v15 }
0x109a   :  { %2104 = vmatmul.mubr.msk.bf16.vlgmr.msra.gmra.mrb[28].mxu1 %vm258_vm3, %v1118_v33  ;;  %2119 = vmatprep.subr.bf16.mxu0 %v2292_v15 }
0x109b   :  { %2114 = vmatpush3.bf16.xpose.msra.mxu1 %v1273_v35  ;;  %2115 = vmatprep.mubr.msk.bf16.mxu1 %vm2293_vm1, %v2292_v15 }
0x109c   :  { %2125 = vmatprep.subr.bf16.mxu1 %v2292_v15 }
0x10a0   :  { %2110 = vmatmul.mubr.msk.bf16.vlgmr.msra.gmra.mrb[36].mxu0 %vm162_vm2, %v1216_v42 }
0x10a1   :  { %2121 = vmatprep.mubr.msk.bf16.mxu0 %vm2293_vm1, %v2292_v15 }
0x10a2   :  { %2116 = vmatmul.mubr.msk.bf16.vlgmr.msra.gmra.mrb[32].mxu1 %vm162_vm2, %v1266_v43 }
0x10a3   :  { %2127 = vmatprep.mubr.msk.bf16.mxu1 %vm2293_vm1, %v2292_v15 }
0x116b   :  { %v2669_v45 = vpop.f32.mrb[32].mxu0 }
0x116c   :  { %v2099_v39 = vpop.f32.mrb[33].mxu0 }
0x116d   :  { %v1164_v41 = vpop.f32.mrb[34].mxu0  ;;  %v2671_v46 = vpop.f32.mrb[28].mxu1 }
0x116e   :  { %v2100_v34 = vpop.f32.mrb[35].mxu0  ;;  %v2105_v49 = vpop.f32.mrb[29].mxu1 }
0x116f   :  { %v1212_v51 = vpop.f32.mrb[30].mxu1 }
0x1170   :  { %v2106_v53 = vpop.f32.mrb[31].mxu1 }
0x1171   :  { %v2712_v53 = vld [vmem:[%s2801_s8 + $0x8] sm:$0x3f] }
0x1173   :  { %v1259_v55 = vpop.f32.mrb[36].mxu0 }
0x1174   :  { %v1260_v56 = vadd.f32 %v1259_v55, %v2438_v52  ;;  %v2111_v57 = vpop.f32.mrb[37].mxu0  ;;  %v1454_v55 = vrot.slane %v2712_v53, %v2393_v25 }
0x1175   :  { %v1262_v59 = vpop.f32.mrb[38].mxu0  ;;  %v1309_v60 = vpop.f32.mrb[32].mxu1 }
0x1176   :  { %v1310_v61 = vadd.f32 %v1309_v60, %v2443_v54  ;;  %v2112_v62 = vpop.f32.mrb[39].mxu0  ;;  %v2117_v63 = vpop.f32.mrb[33].mxu1  ;;  %v1315_v36 = vsel %vm258_vm3, %v1260_v56, -inf }
0x1177   :  { %v1312_v37 = vpop.f32.mrb[34].mxu1  ;;  %1316 = vmax.xlane.f32.xlu1 %v1315_v36 }
0x1178   :  { %v2118_v0 = vpop.f32.mrb[35].mxu1  ;;  %v1318_v1 = vsel %vm258_vm3, %v1310_v61, -inf }
0x1179   :  { %1319 = vmax.xlane.f32.xlu0 %v1318_v1 }
0x1188   :  { %1339 = vrot.lane.b32.xlu1 %v2611_v48, %s2298_s20 }
0x1204   :  { %v1317_v2 = vpop.xlane.xlu1 %1316 }
0x1205   :  { %v1321_v52 = vsub.f32 %v1260_v56, %v1317_v2 }
0x1206   :  { %v1320_v3 = vpop.xlane.xlu0 %1319 }
0x1207   :  { %v1323_v4 = vmul.f32 1.442695, %v1321_v52  ;;  %v1322_v5 = vsub.f32 %v1310_v61, %v1320_v3 }
0x1208   :  { %v1340_v6 = vpop.permute.xlu1 %1339 }
0x1209   :  { %2248 = vpow2.f32 %v1323_v4  ;;  %v1325_v54 = vmul.f32 1.442695, %v1322_v5  ;;  %v1345_v47 = vsel %vm288_vm4, %v1340_v6, 0  ;;  %v2201_v6 = vld [vmem:[%s2799_s6 + $0x18] sm:$0xff]  }
0x120a   :  { %2120 = vmatpush3.bf16.msra.mxu0 %v1345_v47 }
0x120b   :  { %2250 = vpow2.f32 %v1325_v54  ;;  %2131 = vmatprep.subr.bf16.mxu0 %v2292_v15 }
0x1213   :  { %v2249_v7 = vpop.eup %2248 }
0x1214   :  { %v1327_v8 = vsel %vm258_vm3, %v2249_v7, 0.0 }
0x1215   :  { %v2251_v10 = vpop.eup %2250  ;;  %1328 = vadd.xlane.f32.xlu0 %v1327_v8 }
0x1216   :  { %v1330_v48 = vsel %vm258_vm3, %v2251_v10, 0.0 }
0x1219   :  { %1331 = vadd.xlane.f32.xlu0 %v1330_v48 }
0x122f   :  { %1387 = vrot.lane.b32.xlu0 %v2613_v50, %s2298_s20 }
0x12a2   :  { %v1329_v11 = vpop.xlane.xlu0 %1328 }
0x12a3   :  { %2252 = vrcp.f32 %v1329_v11  ;;  %v1542_v11 = vrot.slane %v2712_v53, %v2400_v30  ;;  %v2202_v30 = vld [vmem:[%s2800_s7 + $0x20] sm:$0xff]  }
0x12a6   :  { %v1332_v12 = vpop.xlane.xlu0 %1331 }
0x12a7   :  { %2254 = vrcp.f32 %v1332_v12 }
0x12aa   :  { %v1388_v13 = vpop.permute.xlu0 %1387 }
0x12ab   :  { %v1393_v14 = vsel %vm288_vm4, %v1388_v13, 0 }
0x12ac   :  { %2126 = vmatpush3.bf16.msra.mxu1 %v1393_v14 }
0x12ad   :  { %v2253_v16 = vpop.eup %2252  ;;  %2139 = vmatprep.subr.bf16.mxu1 %v2292_v15 }
0x12ae   :  { %v1335_v44 = vmul.f32 %v2253_v16, %v2249_v7 }
0x12b0   :  { %v1337_v17 = vpack.c.bf16 %v1335_v44, %v1335_v44 }
0x12b1   :  { %v2255_v18 = vpop.eup %2254 }
0x12b2   :  { %v1336_v19 = vmul.f32 %v2255_v18, %v2251_v10  ;;  %2122 = vmatmul.mubr.msk.bf16.vlgmr.msra.gmra.mrb[40].mxu0 %vm258_vm3, %v1337_v17  ;;  %v1548_v17 = vrot.slane %v2712_v53, %v711_v9  ;;  %v2203_v9 = vld [vmem:[%s2800_s7 + $0x28] sm:$0xff]  }
0x12b3   :  { %2135 = vmatprep.mubr.msk.bf16.mxu0 %vm2293_vm1, %v2292_v15  ;;  %2132 = vmatpush3.bf16.msra.mxu0 %v2198_v20 }
0x12b4   :  { %v1338_v50 = vpack.c.bf16 %v1336_v19, %v1336_v19  ;;  %2133 = vmatprep.subr.bf16.mxu0 %v2292_v15 }
0x12b6   :  { %2128 = vmatmul.mubr.msk.bf16.vlgmr.msra.gmra.mrb[36].mxu1 %vm258_vm3, %v1338_v50 }
0x12b7   :  { %2143 = vmatprep.mubr.msk.bf16.mxu1 %vm2293_vm1, %v2292_v15  ;;  %2134 = vmatpush3.bf16.msra.mxu0 %v2199_v21  ;;  %v2204_v21 = vld [vmem:[%s2800_s7 + $0x30] sm:$0xff]  }
0x12b8   :  { %2147 = vmatprep.subr.bf16.mxu0 %v2292_v15 }
0x1385   :  { %v1381_v23 = vpop.f32.mrb[40].mxu0 }
0x1386   :  { %v2123_v27 = vpop.f32.mrb[41].mxu0 }
0x1387   :  { %v1384_v28 = vpop.f32.mrb[42].mxu0  ;;  %v1907_v27 = vld [vmem:[%s2802_s9 + $0x1] ss:$0 sm:$0xff] }
0x1388   :  { %v2124_v29 = vpop.f32.mrb[43].mxu0 }
0x1389   :  { %v1429_v31 = vpop.f32.mrb[36].mxu1 }
0x138a   :  { %v2181_v32 = vpack.i.bf16 %v1429_v31, %v1381_v23  ;;  %v2129_v33 = vpop.f32.mrb[37].mxu1  ;;  %v2205_v23 = vld [vmem:[%s2800_s7 + $0x38] sm:$0xff]  }
0x138b   :  { %v1432_v35 = vpop.f32.mrb[38].mxu1 }
0x138c   :  { %v2130_v42 = vpop.f32.mrb[39].mxu1  ;;  %2182 = vrot.lane.b32.xlu1 %v2181_v32, %s2299_s0 }
0x13fe   :  { %v2183_v43 = vpop.permute.xlu1 %2182 }
0x13ff   :  { %v2185_v39 = vunpack.i.h.bf16 %v2183_v43  ;;  %v2184_v41 = vunpack.i.l.bf16 %v2183_v43 }
0x1401   :  { %v1444_v34 = vsel %vm162_vm2, %v2671_v46, %v2185_v39  ;;  %v1443_v49 = vsel %vm162_vm2, %v2669_v45, %v2184_v41 }
0x1402   :  { %v1445_v51 = vpack.c.bf16 %v1444_v34, %v1443_v49 }
0x1404   :  { %2136 = vmatmul.mubr.msk.bf16.vlgmr.msra.gmra.mrb[44].mxu0 %vm48_vm0, %v1445_v51 }
0x1405   :  { %2155 = vmatprep.mubr.msk.bf16.mxu0 %vm2293_vm1, %v2292_v15  ;;  %2148 = vmatpush3.bf16.msra.mxu0 %v2202_v30  ;;  %v1752_v30 = vrot.slane %v2712_v53, %v913_v22 }
0x1406   :  { %2149 = vmatprep.subr.bf16.mxu0 %v2292_v15 }
0x1409   :  { %2150 = vmatpush3.bf16.msra.mxu0 %v2203_v9 }
0x140a   :  { %2151 = vmatprep.subr.bf16.mxu0 %v2292_v15 }
0x140d   :  { %2152 = vmatpush3.bf16.msra.mxu0 %v2204_v21  ;;  %v1758_v21 = vrot.slane %v2712_v53, %v919_v26 }
0x140e   :  { %2153 = vmatprep.subr.bf16.mxu0 %v2292_v15 }
0x1411   :  { %2154 = vmatpush3.bf16.msra.mxu0 %v2205_v23 }
0x14d7   :  { %v1504_v56 = vpop.f32.mrb[44].mxu0 }
0x14d8   :  { %v1505_v57 = vadd.f32 %v1504_v56, %v1454_v55  ;;  %v2137_v46 = vpop.f32.mrb[45].mxu0 }
0x14d9   :  { %v1507_v59 = vpop.f32.mrb[46].mxu0 }
0x14da   :  { %v1508_v60 = vadd.f32 %v1507_v59, %v1454_v55  ;;  %v2138_v45 = vpop.f32.mrb[47].mxu0  ;;  %v1511_v61 = vadd.f32 %v1505_v57, %v2599_v38 }
0x14dc   :  { %v1513_v62 = vsel %vm48_vm0, %v1511_v61, 0.0  ;;  %v1512_v63 = vadd.f32 %v1508_v60, %v2601_v40  ;;  %v2200_v40 = vld [vmem:[%s2799_s6 + $0x10] sm:$0xff]  }
0x14dd   :  { %1514 = vadd.xlane.f32.xlu1 %v1513_v62  ;;  %2140 = vmatpush3.bf16.msra.mxu1 %v2200_v40 }
0x14de   :  { %v1516_v36 = vsel %vm48_vm0, %v1512_v63, 0.0  ;;  %2141 = vmatprep.subr.bf16.mxu1 %v2292_v15 }
0x14df   :  { %1517 = vadd.xlane.f32.xlu0 %v1516_v36 }
0x14e1   :  { %2142 = vmatpush3.bf16.msra.mxu1 %v2201_v6 }
0x14e2   :  { %2159 = vmatprep.subr.bf16.mxu1 %v2292_v15 }
0x156a   :  { %v1515_v37 = vpop.xlane.xlu1 %1514 }
0x156b   :  { %v1519_v0 = vmul.f32 0.03125, %v1515_v37 }
0x156c   :  { %v1518_v1 = vpop.xlane.xlu0 %1517 }
0x156d   :  { %v1521_v25 = vsub.f32 %v1511_v61, %v1519_v0  ;;  %v1520_v2 = vmul.f32 0.03125, %v1518_v1  ;;  %v1652_v0 = vrot.slane %v2712_v53, %v812_v58 }
0x156f   :  { %v1522_v52 = vsub.f32 %v1512_v63, %v1520_v2  ;;  %v1523_v3 = vmul.f32 %v1521_v25, %v1521_v25 }
0x1571   :  { %v1525_v4 = vsel %vm48_vm0, %v1523_v3, 0.0  ;;  %v1524_v5 = vmul.f32 %v1522_v52, %v1522_v52 }
0x1572   :  { %1526 = vadd.xlane.f32.xlu0 %v1525_v4 }
0x1573   :  { %v1528_v38 = vsel %vm48_vm0, %v1524_v5, 0.0 }
0x1574   :  { %1529 = vadd.xlane.f32.xlu1 %v1528_v38 }
0x15ff   :  { %v1527_v54 = vpop.xlane.xlu0 %1526 }
0x1600   :  { %v1531_v47 = vmul.f32 0.03125, %v1527_v54 }
0x1601   :  { %v1530_v7 = vpop.xlane.xlu1 %1529 }
0x1602   :  { %v1533_v8 = vadd.f32 1e-12, %v1531_v47  ;;  %v1532_v10 = vmul.f32 0.03125, %v1530_v7 }
0x1604   :  { %2256 = vrsqrt.f32 %v1533_v8  ;;  %v1534_v48 = vadd.f32 1e-12, %v1532_v10 }
0x1606   :  { %2258 = vrsqrt.f32 %v1534_v48 }
0x160e   :  { %v2257_v12 = vpop.eup %2256 }
0x160f   :  { %v1537_v13 = vmul.f32 %v2257_v12, %v1521_v25 }
0x1610   :  { %v2259_v14 = vpop.eup %2258 }
0x1611   :  { %v1543_v16 = vmul.f32 %v1542_v11, %v1537_v13  ;;  %v1538_v44 = vmul.f32 %v2259_v14, %v1522_v52  ;;  %v2206_v14 = vld [vmem:[%s2803_s10] sm:$0xff]  }
0x1613   :  { %v1544_v18 = vmul.f32 %v1542_v11, %v1538_v44  ;;  %v1549_v19 = vadd.f32 %v1548_v17, %v1543_v16  ;;  %v2207_v16 = vld [vmem:[%s2803_s10 + $0x8] sm:$0xff]  }
0x1615   :  { %v1550_v50 = vadd.f32 %v1548_v17, %v1544_v18 }
0x1617   :  { %v1551_v20 = vpack.c.bf16 %v1550_v50, %v1549_v19 }
0x1619   :  { %2144 = vmatmul.mubr.msk.bf16.vlgmr.msra.gmra.mrb[40].mxu1 %vm48_vm0, %v1551_v20 }
0x161a   :  { %2163 = vmatprep.mubr.msk.bf16.mxu1 %vm2293_vm1, %v2292_v15  ;;  %2160 = vmatpush3.bf16.msra.mxu1 %v2206_v14 }
0x161b   :  { %2161 = vmatprep.subr.bf16.mxu1 %v2292_v15 }
0x161e   :  { %2162 = vmatpush3.bf16.msra.mxu1 %v2207_v16 }
0x16ec   :  { %v1614_v28 = vpop.f32.mrb[40].mxu1 }
0x16ed   :  { %v1615_v29 = vadd.f32 %v1907_v27, %v1614_v28  ;;  %v2145_v31 = vpop.f32.mrb[41].mxu1 }
0x16ee   :  { %v1617_v32 = vpop.f32.mrb[42].mxu1 }
0x16ef   :  { %v1621_v33 = vmul.f32 %v1615_v29, %v1615_v29  ;;  %v1618_v35 = vadd.f32 %v1907_v27, %v1617_v32  ;;  %v2146_v42 = vpop.f32.mrb[43].mxu1 }
0x16f1   :  { %v1623_v43 = vmul.f32 %v1621_v33, %v1615_v29  ;;  %v1622_v39 = vmul.f32 %v1618_v35, %v1618_v35 }
0x16f3   :  { %v1625_v41 = vmul.f32 0.044715, %v1623_v43  ;;  %v1624_v34 = vmul.f32 %v1622_v39, %v1618_v35 }
0x16f5   :  { %v1627_v49 = vadd.f32 %v1625_v41, %v1615_v29  ;;  %v1626_v51 = vmul.f32 0.044715, %v1624_v34 }
0x16f7   :  { %v1629_v55 = vmul.f32 0.7978846, %v1627_v49  ;;  %v1628_v56 = vadd.f32 %v1626_v51, %v1618_v35 }
0x16f9   :  { %2260 = vtanh.f32 %v1629_v55  ;;  %v1630_v57 = vmul.f32 0.7978846, %v1628_v56 }
0x16fb   :  { %2262 = vtanh.f32 %v1630_v57 }
0x1703   :  { %v2261_v46 = vpop.eup %2260 }
0x1704   :  { %v1633_v59 = vadd.f32 1.0, %v2261_v46 }
0x1705   :  { %v2263_v60 = vpop.eup %2262 }
0x1706   :  { %v1635_v45 = vmul.f32 0.5, %v1633_v59  ;;  %v1634_v61 = vadd.f32 1.0, %v2263_v60 }
0x1708   :  { %v1636_v62 = vmul.f32 0.5, %v1634_v61  ;;  %v1637_v63 = vmul.f32 %v1635_v45, %v1615_v29 }
0x170a   :  { %v1638_v36 = vmul.f32 %v1636_v62, %v1618_v35 }
0x170c   :  { %v1639_v37 = vpack.c.bf16 %v1638_v36, %v1637_v63 }
0x170e   :  { %2156 = vmatmul.mubr.msk.bf16.vlgmr.msra.gmra.mrb[48].mxu0 %vm838_vm5, %v1639_v37 }
0x17e1   :  { %v1714_v1 = vpop.f32.mrb[48].mxu0 }
0x17e2   :  { %v1715_v25 = vadd.f32 %v1714_v1, %v1652_v0  ;;  %v2157_v2 = vpop.f32.mrb[49].mxu0 }
0x17e3   :  { %v1717_v52 = vpop.f32.mrb[50].mxu0 }
0x17e4   :  { %v1718_v3 = vadd.f32 %v1717_v52, %v1652_v0  ;;  %v2158_v4 = vpop.f32.mrb[51].mxu0  ;;  %v1721_v5 = vadd.f32 %v1715_v25, %v1549_v19 }
0x17e6   :  { %v1723_v38 = vsel %vm48_vm0, %v1721_v5, 0.0  ;;  %v1722_v40 = vadd.f32 %v1718_v3, %v1550_v50 }
0x17e7   :  { %1724 = vadd.xlane.f32.xlu1 %v1723_v38 }
0x17e8   :  { %v1726_v6 = vsel %vm48_vm0, %v1722_v40, 0.0 }
0x17e9   :  { %1727 = vadd.xlane.f32.xlu0 %v1726_v6 }
0x1874   :  { %v1725_v54 = vpop.xlane.xlu1 %1724 }
0x1875   :  { %v1729_v47 = vmul.f32 0.03125, %v1725_v54 }
0x1876   :  { %v1728_v7 = vpop.xlane.xlu0 %1727 }
0x1877   :  { %v1731_v8 = vsub.f32 %v1721_v5, %v1729_v47  ;;  %v1730_v10 = vmul.f32 0.03125, %v1728_v7 }
0x1879   :  { %v1732_v58 = vsub.f32 %v1722_v40, %v1730_v10  ;;  %v1733_v48 = vmul.f32 %v1731_v8, %v1731_v8 }
0x187b   :  { %v1735_v11 = vsel %vm48_vm0, %v1733_v48, 0.0  ;;  %v1734_v12 = vmul.f32 %v1732_v58, %v1732_v58 }
0x187c   :  { %1736 = vadd.xlane.f32.xlu1 %v1735_v11 }
0x187d   :  { %v1738_v13 = vsel %vm48_vm0, %v1734_v12, 0.0 }
0x187e   :  { %1739 = vadd.xlane.f32.xlu0 %v1738_v13 }
0x1909   :  { %v1737_v44 = vpop.xlane.xlu1 %1736 }
0x190a   :  { %v1741_v17 = vmul.f32 0.03125, %v1737_v44 }
0x190b   :  { %v1740_v18 = vpop.xlane.xlu0 %1739 }
0x190c   :  { %v1743_v19 = vadd.f32 1e-12, %v1741_v17  ;;  %v1742_v50 = vmul.f32 0.03125, %v1740_v18 }
0x190e   :  { %2264 = vrsqrt.f32 %v1743_v19  ;;  %v1744_v20 = vadd.f32 1e-12, %v1742_v50 }
0x1910   :  { %2266 = vrsqrt.f32 %v1744_v20 }
0x1918   :  { %v2265_v9 = vpop.eup %2264 }
0x1919   :  { %v1747_v23 = vmul.f32 %v2265_v9, %v1731_v8 }
0x191a   :  { %v2267_v15 = vpop.eup %2266 }
0x191b   :  { %v1753_v27 = vmul.f32 %v1752_v30, %v1747_v23  ;;  %v1748_v28 = vmul.f32 %v2267_v15, %v1732_v58 }
0x191d   :  { %v1759_v29 = vadd.f32 %v1758_v21, %v1753_v27  ;;  %v1754_v31 = vmul.f32 %v1752_v30, %v1748_v28 }
0x191f   :  { %v1760_v32 = vadd.f32 %v1758_v21, %v1754_v31  ;;  %v1761_v33 = vpack.c.bf16 %v1759_v29, %v1759_v29 }
0x1921   :  { %v1762_v35 = vpack.c.bf16 %v1760_v32, %v1760_v32  ;;  %v1776_v43 = vunpack.c.l.b16 %v1761_v33 }
0x1923   :  { %v1777_v42 = vunpack.c.l.b16 %v1762_v35 }
0x1925   :  { %v1778_v39 = vrot.slane %v1777_v42, 7 }
0x1927   :  { %v1780_v41 = vsel %vm1779_vm6, %v1778_v39, %v1776_v43 }
0x1928   :  { %v1781_v22 = vpack.c.b16 %v1780_v41, %v1780_v41 }
0x192a   :  { %2164 = vmatmul.mubr.msk.bf16.vlgmr.msra.gmra.mrb[44].mxu1 %vm48_vm0, %v1781_v22 }
0x19fd   :  { %v1831_v26 = vpop.f32.mrb[44].mxu1 }
0x19fe   :  { %v1832_v53 = vadd.f32 %v1924_v24, %v1831_v26  ;;  %v2165_v34 = vpop.f32.mrb[45].mxu1 }
0x19ff   :  { %v1834_v49 = vpop.f32.mrb[46].mxu1 }
0x1a00   :  { %v2166_v51 = vpop.f32.mrb[47].mxu1  ;;  %1838 = vst.msk [vmem:[#allocation2] sm:$0x3] %vm1837_vm7, %v1832_v53 }
0x1a01   :  { %2279 = shalt.err (!%p2276_p4)
}
0x1a02   :  { %s2280_s11 = scalar_lea.hbm %s2805_s12, 32 }
0x1a03   :  { %p2281_p5 = scmp.ne.s32.totalorder %s2805_s12, %s2280_s11  ;;  %p2284_p6 = scmp.lt.u32.totalorder %s2280_s11, %s2805_s12 }
0x1a05   :  { %p2286_p7 = pnand %p2284_p6, %p2281_p5 }
0x1a07   :  { %2289 = shalt.err (!%p2286_p7)
}
0x1a08   :  { %1848 = dma.vmem_to_hbm [thread:$0]  %s1846_s3, 32, %s2805_s12, [#allocation3]  }
0x1a09   :  { %2290 = dma.done.wait [#allocation3], 32  }
0x1a0a   :  { %2291 = vsyncadd [#allocation3], 4294967264 }
0x1a0b   :  { %1852 = vsyncpa [#allocation3], 1 }

</bundles_post_ra>
